<compile_context>
chip_gen: v5e
topology: v5e:2x2
jax: 0.10.0
libtpu: 0.0.40
codegen_flags: <defaults>
</compile_context>

<pallas_src>
import functools

import jax
import jax.numpy as jnp
from jax import lax
from jax.experimental import pallas as pl
from jax.experimental.pallas import tpu as pltpu


def _round_up(x, m):
    return (x + m - 1) // m * m


def _sigmoid_tanh(x):
    # sigmoid(x) = 0.5 * (1 + tanh(x/2)): a single EUP push per gate instead of
    # exp + reciprocal, reducing EUP-slot pressure on the serial recurrence.
    return 0.5 * jnp.tanh(0.5 * x) + 0.5


def _lstm_decoder_kernel(xp_ref, whh_ref, wout_ref, bout_ref, y_ref,
                         h_ref, c_ref, hbuf_ref, *, unroll):
    """One (batch_block, time_chunk) grid step.

    xp_ref   : (Tc, Bb, 4*Hp) bf16  precomputed x @ W_ih^T + (b_ih + b_hh)
    whh_ref  : (Hp, 4*Hp)     bf16  recurrent weight (transposed, per-gate padded)
    wout_ref : (Hp, Vp)       bf16  output projection weight (transposed, padded)
    bout_ref : (1, Vp)        f32   output bias
    y_ref    : (Tc, Bb, Vp)   f32   projected hidden states for this chunk
    h_ref/c_ref : (Bb, Hp)    f32   carried LSTM state (persists across chunks)
    hbuf_ref : (Tc, Bb, Hp)   f32   per-chunk hidden-state staging buffer
    """
    f32 = jnp.float32

    # Fresh (h0, c0) = 0 at the first time-chunk of each batch block
    # (time is the innermost grid axis).
    @pl.when(pl.program_id(1) == 0)
    def _():
        h_ref[...] = jnp.zeros_like(h_ref)
        c_ref[...] = jnp.zeros_like(c_ref)

    hp = h_ref.shape[-1]
    t_chunk, bb = xp_ref.shape[0], xp_ref.shape[1]
    whh = whh_ref[...]            # loaded once per chunk, reused every timestep

    def step(t, carry):
        # h/c live in vregs across the unrolled steps: no per-step VMEM ld/st
        # of the state on the serial critical path.
        h, c = carry
        gates = xp_ref[t].astype(f32) + jnp.dot(
            h.astype(whh.dtype), whh, preferred_element_type=f32)   # (Bb, 4Hp)
        # Gate slices land on 128-lane boundaries because Hp % 128 == 0.
        i_g = _sigmoid_tanh(gates[:, 0 * hp:1 * hp])
        f_g = _sigmoid_tanh(gates[:, 1 * hp:2 * hp])
        g_g = jnp.tanh(gates[:, 2 * hp:3 * hp])
        o_g = _sigmoid_tanh(gates[:, 3 * hp:4 * hp])
        c_new = f_g * c + i_g * g_g
        h_new = o_g * jnp.tanh(c_new)
        hbuf_ref[t] = h_new                    # lane-dense (Bb, Hp) store
        return (h_new, c_new)

    h_last, c_last = lax.fori_loop(0, t_chunk, step,
                                   (h_ref[...], c_ref[...]), unroll=unroll)
    h_ref[...] = h_last
    c_ref[...] = c_last

    # Fused output projection for the whole chunk: one MXU matmul that sits off
    # the serial h->h critical path and avoids an h_all HBM round-trip.
    vp = wout_ref.shape[-1]
    h_chunk = hbuf_ref[...].reshape(t_chunk * bb, hp).astype(whh.dtype)
    y = jnp.dot(h_chunk, wout_ref[...], preferred_element_type=f32)
    y = y + bout_ref[...]
    y_ref[...] = y.reshape(t_chunk, bb, vp)


def _num_tensorcores():
    # v7x exposes 2 TensorCores per chip; v5e/v6e have 1.  Best-effort query;
    # falling back to 1 is always correct (just no megacore batch split).
    try:
        kind = jax.devices()[0].device_kind.lower()
        if "v7" in kind or "7x" in kind:
            return 2
    except Exception:
        pass
    return 1


def _vmem_bytes(t_chunk, bb, hp, vp):
    bf16, f32 = 2, 4
    return (2 * t_chunk * bb * 4 * hp * bf16      # xp blocks (double-buffered)
            + 2 * t_chunk * bb * vp * f32         # y blocks (double-buffered)
            + 2 * hp * 4 * hp * bf16              # whh (pipeline holds 2 bufs)
            + 2 * hp * vp * bf16                  # w_out
            + 2 * vp * f32                        # b_out
            + 2 * bb * hp * f32                   # h, c scratch
            + t_chunk * bb * hp * f32)            # hidden staging buffer


def lstm_decoder_forward(x, w_ih, w_hh, b_ih, b_hh, w_out, b_out,
                         *, t_chunk=None, block_b=None, unroll=None):
    """x: [T, B, D] f32.  Returns y: [T, B, V] f32 (projected hidden states).

    Weight convention matches torch.nn.LSTM / nn.Linear:
      w_ih: (4H, D), w_hh: (4H, H), b_ih/b_hh: (4H,), w_out: (V, H), b_out: (V,)
    """
    T, B, D = x.shape
    H = w_hh.shape[1]
    V = w_out.shape[0]

    f32, bf16 = jnp.float32, jnp.bfloat16

    # ---- hardware-aligned padded sizes ----
    Hp = _round_up(H, 128)            # lanes
    Vp = _round_up(V, 128)            # lanes
    Bp = _round_up(B, 8)              # sublanes

    # ---- per-generation tiling ----
    if block_b is None:
        n_tc = _num_tensorcores()
        if n_tc > 1 and Bp >= 16 and (Bp // 2) % 8 == 0:
            block_b = Bp // 2         # fill both TensorCores (v7x)
        else:
            block_b = Bp              # single-TC chips: keep matmul M maximal
    bb = block_b
    assert Bp % bb == 0 and bb % 8 == 0
    nb = Bp // bb

    try:
        vmem_cap = int(pltpu.get_tpu_info().vmem_capacity_bytes)
    except Exception:
        vmem_cap = 64 << 20           # v7x-safe fallback
    vmem_budget = int(0.55 * vmem_cap)

    if t_chunk is None:
        t_chunk = 1
        for cand in (32, 16, 8, 4, 2):
            if _vmem_bytes(cand, bb, Hp, Vp) <= vmem_budget:
                t_chunk = cand
                break
    t_chunk = max(1, min(t_chunk, T))
    Tp = _round_up(T, t_chunk)
    nt = Tp // t_chunk

    if unroll is None:
        # Full unroll for small gate tiles; cap unroll when (Bb, 4Hp) gate
        # vregs per step would overflow the 64-vreg file.
        if bb * Hp <= 8 * 512:
            unroll = t_chunk
        elif bb * Hp <= 8 * 2048:
            unroll = min(t_chunk, 4)
        else:
            unroll = min(t_chunk, 2)
    unroll = max(1, min(unroll, t_chunk))

    # ---- phase 1: input projection for ALL timesteps (bf16 MXU, f32 acc) ----
    # Pad the small weight per gate instead of pad+reshaping the big activation.
    w_ih_p = jnp.pad(w_ih.reshape(4, H, D), ((0, 0), (0, Hp - H), (0, 0)))
    w_ih_p = w_ih_p.reshape(4 * Hp, D).T.astype(bf16)                  # (D, 4Hp)
    bias_p = jnp.pad((b_ih + b_hh).astype(f32).reshape(4, H),
                     ((0, 0), (0, Hp - H))).reshape(4 * Hp)            # (4Hp,)

    xp = jnp.dot(x.reshape(T * B, D).astype(bf16), w_ih_p,
                 preferred_element_type=f32) + bias_p                  # f32
    xp = xp.astype(bf16).reshape(T, B, 4 * Hp)
    xp = jnp.pad(xp, ((0, Tp - T), (0, Bp - B), (0, 0)))   # (Tp, Bp, 4Hp) bf16

    # Recurrent + output weights, transposed, per-gate padded, bf16 for the MXU.
    whh_t = jnp.pad(w_hh.T.reshape(H, 4, H),
                    ((0, Hp - H), (0, 0), (0, Hp - H)))
    whh_t = whh_t.reshape(Hp, 4 * Hp).astype(bf16)                     # (Hp, 4Hp)
    wout_t = jnp.pad(w_out.T, ((0, Hp - H), (0, Vp - V))).astype(bf16)  # (Hp, Vp)
    bout_p = jnp.pad(b_out.astype(f32), (0, Vp - V)).reshape(1, Vp)

    # ---- VMEM budget + scheduler hint ----
    need = _vmem_bytes(t_chunk, bb, Hp, Vp)
    vmem_limit = int(max(32 << 20, min(need * 5 // 4 + (1 << 20), vmem_cap)))

    try:
        cost = pl.CostEstimate(
            flops=2 * Tp * Bp * Hp * 4 * Hp + 2 * Tp * Bp * Hp * Vp,
            transcendentals=5 * Tp * Bp * Hp,
            bytes_accessed=(Tp * Bp * 4 * Hp * 2 + Tp * Bp * Vp * 4
                            + Hp * 4 * Hp * 2 + Hp * Vp * 2))
    except Exception:
        cost = None

    kernel = functools.partial(_lstm_decoder_kernel, unroll=unroll)

    # ---- phase 2: sequential recurrence + fused output projection (Pallas) ----
    y_pad = pl.pallas_call(
        kernel,
        out_shape=jax.ShapeDtypeStruct((Tp, Bp, Vp), f32),
        grid_spec=pltpu.PrefetchScalarGridSpec(
            num_scalar_prefetch=0,
            grid=(nb, nt),
            in_specs=[
                pl.BlockSpec((t_chunk, bb, 4 * Hp), lambda b, t: (t, b, 0)),
                # TODO(synk): single-buffer the constant-index weight inputs
                # (pipeline_mode=pl.Buffered(1)) once universally available;
                # default double-buffering only costs VMEM, not bandwidth.
                pl.BlockSpec((Hp, 4 * Hp), lambda b, t: (0, 0)),
                pl.BlockSpec((Hp, Vp), lambda b, t: (0, 0)),
                pl.BlockSpec((1, Vp), lambda b, t: (0, 0)),
            ],
            out_specs=pl.BlockSpec((t_chunk, bb, Vp), lambda b, t: (t, b, 0)),
            scratch_shapes=[
                pltpu.VMEM((bb, Hp), f32),            # h state (across chunks)
                pltpu.VMEM((bb, Hp), f32),            # c state (across chunks)
                pltpu.VMEM((t_chunk, bb, Hp), f32),   # per-chunk hidden staging
            ],
        ),
        compiler_params=pltpu.CompilerParams(
            dimension_semantics=("parallel", "arbitrary"),
            vmem_limit_bytes=vmem_limit,
        ),
        cost_estimate=cost,
    )(xp, whh_t, wout_t, bout_p)

    return y_pad[:T, :B, :V]


def _reference_forward(x, w_ih, w_hh, b_ih, b_hh, w_out, b_out):
    """Pure-JAX reference matching torch.nn.LSTM + nn.Linear semantics."""
    T, B, D = x.shape
    H = w_hh.shape[1]

    def step(carry, x_t):
        h, c = carry
        gates = x_t @ w_ih.T + b_ih + h @ w_hh.T + b_hh
        i, f, g, o = jnp.split(gates, 4, axis=-1)
        i, f, o = jax.nn.sigmoid(i), jax.nn.sigmoid(f), jax.nn.sigmoid(o)
        g = jnp.tanh(g)
        c = f * c + i * g
        h = o * jnp.tanh(c)
        return (h, c), h

    h0 = jnp.zeros((B, H), jnp.float32)
    c0 = jnp.zeros((B, H), jnp.float32)
    _, hs = lax.scan(step, (h0, c0), x)
    return hs @ w_out.T + b_out


if __name__ == "__main__":
    # Small shapes consistent with the module: seq=8, batch=2, in=32, hidden=32, out=32.
    T, B, D, H, V = 8, 2, 32, 32, 32

    key = jax.random.PRNGKey(0)
    keys = jax.random.split(key, 8)
    bound = 1.0 / (H ** 0.5)  # torch nn.LSTM / nn.Linear default init range

    x = jax.random.normal(keys[0], (T, B, D), jnp.float32)
    w_ih = jax.random.uniform(keys[1], (4 * H, D), jnp.float32, -bound, bound)
    w_hh = jax.random.uniform(keys[2], (4 * H, H), jnp.float32, -bound, bound)
    b_ih = jax.random.uniform(keys[3], (4 * H,), jnp.float32, -bound, bound)
    b_hh = jax.random.uniform(keys[4], (4 * H,), jnp.float32, -bound, bound)
    w_out = jax.random.uniform(keys[5], (V, H), jnp.float32, -bound, bound)
    b_out = jax.random.uniform(keys[6], (V,), jnp.float32, -bound, bound)

    y = lstm_decoder_forward(x, w_ih, w_hh, b_ih, b_hh, w_out, b_out)
    y = jax.block_until_ready(y)

    y_ref = _reference_forward(x, w_ih, w_hh, b_ih, b_hh, w_out, b_out)
    assert y.shape == (T, B, V)
    # bf16 operands in the input / recurrent / output matmuls (f32 accumulation,
    # f32 state): loosened tolerance vs. the all-f32 reference.
    assert jnp.allclose(y, y_ref, atol=5e-2, rtol=5e-2), "mismatch vs reference"

    print("KERNEL_OK")
</pallas_src>

<mosaic_0001>
module attributes {stable_mosaic.version = 11 : i64} {
  func.func @_lstm_decoder_kernel(%arg0: i32, %arg1: i32, %arg2: memref<8x8x512xbf16, #tpu.memory_space<vmem>>, %arg3: memref<128x512xbf16, #tpu.memory_space<vmem>>, %arg4: memref<128x128xbf16, #tpu.memory_space<vmem>>, %arg5: memref<1x128xf32, #tpu.memory_space<vmem>>, %arg6: memref<8x8x128xf32, #tpu.memory_space<vmem>>, %arg7: memref<8x128xf32, #tpu.memory_space<vmem>>, %arg8: memref<8x128xf32, #tpu.memory_space<vmem>>, %arg9: memref<8x8x128xf32, #tpu.memory_space<vmem>>) attributes {dimension_semantics = [#tpu.dimension_semantics<parallel>, #tpu.dimension_semantics<arbitrary>], iteration_bounds = array<i64: 1, 1>, scalar_prefetch = 0 : i64, scratch_operands = 3 : i64, tpu.core_type = #tpu.core_type<tc>, window_params = [{transform_indices = @transform_0, window_bounds = array<i64: 8, 8, 512>}, {pipeline_mode = #tpu.pipeline_mode<synchronous>, transform_indices = @transform_1, window_bounds = array<i64: 128, 512>}, {pipeline_mode = #tpu.pipeline_mode<synchronous>, transform_indices = @transform_2, window_bounds = array<i64: 128, 128>}, {pipeline_mode = #tpu.pipeline_mode<synchronous>, transform_indices = @transform_3, window_bounds = array<i64: 1, 128>}, {transform_indices = @transform_4, window_bounds = array<i64: 8, 8, 128>}]} {
    %c0_i32 = arith.constant 0 : i32
    %0 = arith.cmpi eq, %arg1, %c0_i32 : i32
    %1 = arith.extui %0 : i1 to i32
    %c0_i32_0 = arith.constant 0 : i32
    %2 = arith.cmpi ne, %1, %c0_i32_0 : i32
    scf.if %2 {
      %cst_133 = arith.constant 0.000000e+00 : f32
      %354 = vector.broadcast %cst_133 : f32 to vector<8x128xf32>
      %c0_134 = arith.constant 0 : index
      %c0_135 = arith.constant 0 : index
      %355 = vector.load %arg7[%c0_134, %c0_135] : memref<8x128xf32, #tpu.memory_space<vmem>>, vector<8x128xf32>
      tpu.vector_store %arg7[%c0_134, %c0_135], %354 {strides = array<i32>} : memref<8x128xf32, #tpu.memory_space<vmem>>, vector<8x128xf32>,
      %cst_136 = arith.constant 0.000000e+00 : f32
      %356 = vector.broadcast %cst_136 : f32 to vector<8x128xf32>
      %c0_137 = arith.constant 0 : index
      %c0_138 = arith.constant 0 : index
      %357 = vector.load %arg8[%c0_137, %c0_138] : memref<8x128xf32, #tpu.memory_space<vmem>>, vector<8x128xf32>
      tpu.vector_store %arg8[%c0_137, %c0_138], %356 {strides = array<i32>} : memref<8x128xf32, #tpu.memory_space<vmem>>, vector<8x128xf32>,
    } else {
    }
    %c0 = arith.constant 0 : index
    %c0_1 = arith.constant 0 : index
    %3 = vector.load %arg3[%c0, %c0_1] : memref<128x512xbf16, #tpu.memory_space<vmem>>, vector<128x512xbf16>
    %c0_2 = arith.constant 0 : index
    %c0_3 = arith.constant 0 : index
    %4 = vector.load %arg7[%c0_2, %c0_3] : memref<8x128xf32, #tpu.memory_space<vmem>>, vector<8x128xf32>
    %c0_4 = arith.constant 0 : index
    %c0_5 = arith.constant 0 : index
    %5 = vector.load %arg8[%c0_4, %c0_5] : memref<8x128xf32, #tpu.memory_space<vmem>>, vector<8x128xf32>
    %c0_i32_6 = arith.constant 0 : i32
    %6 = arith.index_cast %c0_i32_6 : i32 to index
    %c0_7 = arith.constant 0 : index
    %c0_8 = arith.constant 0 : index
    %7 = vector.load %arg2[%6, %c0_7, %c0_8] : memref<8x8x512xbf16, #tpu.memory_space<vmem>>, vector<1x8x512xbf16>
    %8 = vector.shape_cast %7 : vector<1x8x512xbf16> to vector<8x512xbf16>
    %9 = arith.extf %8 : vector<8x512xbf16> to vector<8x512xf32>
    %10 = arith.truncf %4 : vector<8x128xf32> to vector<8x128xbf16>
    %cst = arith.constant dense<0.000000e+00> : vector<8x512xf32>
    %11 = tpu.matmul %10, %3, %cst {dimension_numbers = #tpu.dot_dimension_numbers<[1], [0], [0], [1], [0, 0, 1, 1], [], []>} : vector<8x128xbf16>, vector<128x512xbf16>, vector<8x512xf32> -> vector<8x512xf32>
    %12 = arith.addf %9, %11 : vector<8x512xf32>
    %13 = vector.extract_strided_slice %12 {offsets = [0, 0], sizes = [8, 128], strides = [1, 1]} : vector<8x512xf32> to vector<8x128xf32>
    %cst_9 = arith.constant 5.000000e-01 : f32
    %14 = vector.broadcast %cst_9 : f32 to vector<8x128xf32>
    %15 = arith.mulf %14, %13 : vector<8x128xf32>
    %16 = math.tanh %15 : vector<8x128xf32>
    %cst_10 = arith.constant 5.000000e-01 : f32
    %17 = vector.broadcast %cst_10 : f32 to vector<8x128xf32>
    %18 = arith.mulf %17, %16 : vector<8x128xf32>
    %cst_11 = arith.constant 5.000000e-01 : f32
    %19 = vector.broadcast %cst_11 : f32 to vector<8x128xf32>
    %20 = arith.addf %18, %19 : vector<8x128xf32>
    %21 = vector.extract_strided_slice %12 {offsets = [0, 128], sizes = [8, 128], strides = [1, 1]} : vector<8x512xf32> to vector<8x128xf32>
    %cst_12 = arith.constant 5.000000e-01 : f32
    %22 = vector.broadcast %cst_12 : f32 to vector<8x128xf32>
    %23 = arith.mulf %22, %21 : vector<8x128xf32>
    %24 = math.tanh %23 : vector<8x128xf32>
    %cst_13 = arith.constant 5.000000e-01 : f32
    %25 = vector.broadcast %cst_13 : f32 to vector<8x128xf32>
    %26 = arith.mulf %25, %24 : vector<8x128xf32>
    %cst_14 = arith.constant 5.000000e-01 : f32
    %27 = vector.broadcast %cst_14 : f32 to vector<8x128xf32>
    %28 = arith.addf %26, %27 : vector<8x128xf32>
    %29 = vector.extract_strided_slice %12 {offsets = [0, 256], sizes = [8, 128], strides = [1, 1]} : vector<8x512xf32> to vector<8x128xf32>
    %30 = math.tanh %29 : vector<8x128xf32>
    %31 = vector.extract_strided_slice %12 {offsets = [0, 384], sizes = [8, 128], strides = [1, 1]} : vector<8x512xf32> to vector<8x128xf32>
    %cst_15 = arith.constant 5.000000e-01 : f32
    %32 = vector.broadcast %cst_15 : f32 to vector<8x128xf32>
    %33 = arith.mulf %32, %31 : vector<8x128xf32>
    %34 = math.tanh %33 : vector<8x128xf32>
    %cst_16 = arith.constant 5.000000e-01 : f32
    %35 = vector.broadcast %cst_16 : f32 to vector<8x128xf32>
    %36 = arith.mulf %35, %34 : vector<8x128xf32>
    %cst_17 = arith.constant 5.000000e-01 : f32
    %37 = vector.broadcast %cst_17 : f32 to vector<8x128xf32>
    %38 = arith.addf %36, %37 : vector<8x128xf32>
    %39 = arith.mulf %28, %5 : vector<8x128xf32>
    %40 = arith.mulf %20, %30 : vector<8x128xf32>
    %41 = arith.addf %39, %40 : vector<8x128xf32>
    %42 = math.tanh %41 : vector<8x128xf32>
    %43 = arith.mulf %38, %42 : vector<8x128xf32>
    %44 = arith.index_cast %c0_i32_6 : i32 to index
    %c0_18 = arith.constant 0 : index
    %c0_19 = arith.constant 0 : index
    %45 = vector.load %arg9[%44, %c0_18, %c0_19] : memref<8x8x128xf32, #tpu.memory_space<vmem>>, vector<1x8x128xf32>
    %46 = vector.shape_cast %45 : vector<1x8x128xf32> to vector<8x128xf32>
    %47 = vector.shape_cast %43 : vector<8x128xf32> to vector<1x8x128xf32>
    tpu.vector_store %arg9[%44, %c0_18, %c0_19], %47 {strides = array<i32>} : memref<8x8x128xf32, #tpu.memory_space<vmem>>, vector<1x8x128xf32>,
    %c1_i32 = arith.constant 1 : i32
    %48 = arith.index_cast %c1_i32 : i32 to index
    %c0_20 = arith.constant 0 : index
    %c0_21 = arith.constant 0 : index
    %49 = vector.load %arg2[%48, %c0_20, %c0_21] : memref<8x8x512xbf16, #tpu.memory_space<vmem>>, vector<1x8x512xbf16>
    %50 = vector.shape_cast %49 : vector<1x8x512xbf16> to vector<8x512xbf16>
    %51 = arith.extf %50 : vector<8x512xbf16> to vector<8x512xf32>
    %52 = arith.truncf %43 : vector<8x128xf32> to vector<8x128xbf16>
    %cst_22 = arith.constant dense<0.000000e+00> : vector<8x512xf32>
    %53 = tpu.matmul %52, %3, %cst_22 {dimension_numbers = #tpu.dot_dimension_numbers<[1], [0], [0], [1], [0, 0, 1, 1], [], []>} : vector<8x128xbf16>, vector<128x512xbf16>, vector<8x512xf32> -> vector<8x512xf32>
    %54 = arith.addf %51, %53 : vector<8x512xf32>
    %55 = vector.extract_strided_slice %54 {offsets = [0, 0], sizes = [8, 128], strides = [1, 1]} : vector<8x512xf32> to vector<8x128xf32>
    %cst_23 = arith.constant 5.000000e-01 : f32
    %56 = vector.broadcast %cst_23 : f32 to vector<8x128xf32>
    %57 = arith.mulf %56, %55 : vector<8x128xf32>
    %58 = math.tanh %57 : vector<8x128xf32>
    %cst_24 = arith.constant 5.000000e-01 : f32
    %59 = vector.broadcast %cst_24 : f32 to vector<8x128xf32>
    %60 = arith.mulf %59, %58 : vector<8x128xf32>
    %cst_25 = arith.constant 5.000000e-01 : f32
    %61 = vector.broadcast %cst_25 : f32 to vector<8x128xf32>
    %62 = arith.addf %60, %61 : vector<8x128xf32>
    %63 = vector.extract_strided_slice %54 {offsets = [0, 128], sizes = [8, 128], strides = [1, 1]} : vector<8x512xf32> to vector<8x128xf32>
    %cst_26 = arith.constant 5.000000e-01 : f32
    %64 = vector.broadcast %cst_26 : f32 to vector<8x128xf32>
    %65 = arith.mulf %64, %63 : vector<8x128xf32>
    %66 = math.tanh %65 : vector<8x128xf32>
    %cst_27 = arith.constant 5.000000e-01 : f32
    %67 = vector.broadcast %cst_27 : f32 to vector<8x128xf32>
    %68 = arith.mulf %67, %66 : vector<8x128xf32>
    %cst_28 = arith.constant 5.000000e-01 : f32
    %69 = vector.broadcast %cst_28 : f32 to vector<8x128xf32>
    %70 = arith.addf %68, %69 : vector<8x128xf32>
    %71 = vector.extract_strided_slice %54 {offsets = [0, 256], sizes = [8, 128], strides = [1, 1]} : vector<8x512xf32> to vector<8x128xf32>
    %72 = math.tanh %71 : vector<8x128xf32>
    %73 = vector.extract_strided_slice %54 {offsets = [0, 384], sizes = [8, 128], strides = [1, 1]} : vector<8x512xf32> to vector<8x128xf32>
    %cst_29 = arith.constant 5.000000e-01 : f32
    %74 = vector.broadcast %cst_29 : f32 to vector<8x128xf32>
    %75 = arith.mulf %74, %73 : vector<8x128xf32>
    %76 = math.tanh %75 : vector<8x128xf32>
    %cst_30 = arith.constant 5.000000e-01 : f32
    %77 = vector.broadcast %cst_30 : f32 to vector<8x128xf32>
    %78 = arith.mulf %77, %76 : vector<8x128xf32>
    %cst_31 = arith.constant 5.000000e-01 : f32
    %79 = vector.broadcast %cst_31 : f32 to vector<8x128xf32>
    %80 = arith.addf %78, %79 : vector<8x128xf32>
    %81 = arith.mulf %70, %41 : vector<8x128xf32>
    %82 = arith.mulf %62, %72 : vector<8x128xf32>
    %83 = arith.addf %81, %82 : vector<8x128xf32>
    %84 = math.tanh %83 : vector<8x128xf32>
    %85 = arith.mulf %80, %84 : vector<8x128xf32>
    %86 = arith.index_cast %c1_i32 : i32 to index
    %c0_32 = arith.constant 0 : index
    %c0_33 = arith.constant 0 : index
    %87 = vector.load %arg9[%86, %c0_32, %c0_33] : memref<8x8x128xf32, #tpu.memory_space<vmem>>, vector<1x8x128xf32>
    %88 = vector.shape_cast %87 : vector<1x8x128xf32> to vector<8x128xf32>
    %89 = vector.shape_cast %85 : vector<8x128xf32> to vector<1x8x128xf32>
    tpu.vector_store %arg9[%86, %c0_32, %c0_33], %89 {strides = array<i32>} : memref<8x8x128xf32, #tpu.memory_space<vmem>>, vector<1x8x128xf32>,
    %c2_i32 = arith.constant 2 : i32
    %90 = arith.index_cast %c2_i32 : i32 to index
    %c0_34 = arith.constant 0 : index
    %c0_35 = arith.constant 0 : index
    %91 = vector.load %arg2[%90, %c0_34, %c0_35] : memref<8x8x512xbf16, #tpu.memory_space<vmem>>, vector<1x8x512xbf16>
    %92 = vector.shape_cast %91 : vector<1x8x512xbf16> to vector<8x512xbf16>
    %93 = arith.extf %92 : vector<8x512xbf16> to vector<8x512xf32>
    %94 = arith.truncf %85 : vector<8x128xf32> to vector<8x128xbf16>
    %cst_36 = arith.constant dense<0.000000e+00> : vector<8x512xf32>
    %95 = tpu.matmul %94, %3, %cst_36 {dimension_numbers = #tpu.dot_dimension_numbers<[1], [0], [0], [1], [0, 0, 1, 1], [], []>} : vector<8x128xbf16>, vector<128x512xbf16>, vector<8x512xf32> -> vector<8x512xf32>
    %96 = arith.addf %93, %95 : vector<8x512xf32>
    %97 = vector.extract_strided_slice %96 {offsets = [0, 0], sizes = [8, 128], strides = [1, 1]} : vector<8x512xf32> to vector<8x128xf32>
    %cst_37 = arith.constant 5.000000e-01 : f32
    %98 = vector.broadcast %cst_37 : f32 to vector<8x128xf32>
    %99 = arith.mulf %98, %97 : vector<8x128xf32>
    %100 = math.tanh %99 : vector<8x128xf32>
    %cst_38 = arith.constant 5.000000e-01 : f32
    %101 = vector.broadcast %cst_38 : f32 to vector<8x128xf32>
    %102 = arith.mulf %101, %100 : vector<8x128xf32>
    %cst_39 = arith.constant 5.000000e-01 : f32
    %103 = vector.broadcast %cst_39 : f32 to vector<8x128xf32>
    %104 = arith.addf %102, %103 : vector<8x128xf32>
    %105 = vector.extract_strided_slice %96 {offsets = [0, 128], sizes = [8, 128], strides = [1, 1]} : vector<8x512xf32> to vector<8x128xf32>
    %cst_40 = arith.constant 5.000000e-01 : f32
    %106 = vector.broadcast %cst_40 : f32 to vector<8x128xf32>
    %107 = arith.mulf %106, %105 : vector<8x128xf32>
    %108 = math.tanh %107 : vector<8x128xf32>
    %cst_41 = arith.constant 5.000000e-01 : f32
    %109 = vector.broadcast %cst_41 : f32 to vector<8x128xf32>
    %110 = arith.mulf %109, %108 : vector<8x128xf32>
    %cst_42 = arith.constant 5.000000e-01 : f32
    %111 = vector.broadcast %cst_42 : f32 to vector<8x128xf32>
    %112 = arith.addf %110, %111 : vector<8x128xf32>
    %113 = vector.extract_strided_slice %96 {offsets = [0, 256], sizes = [8, 128], strides = [1, 1]} : vector<8x512xf32> to vector<8x128xf32>
    %114 = math.tanh %113 : vector<8x128xf32>
    %115 = vector.extract_strided_slice %96 {offsets = [0, 384], sizes = [8, 128], strides = [1, 1]} : vector<8x512xf32> to vector<8x128xf32>
    %cst_43 = arith.constant 5.000000e-01 : f32
    %116 = vector.broadcast %cst_43 : f32 to vector<8x128xf32>
    %117 = arith.mulf %116, %115 : vector<8x128xf32>
    %118 = math.tanh %117 : vector<8x128xf32>
    %cst_44 = arith.constant 5.000000e-01 : f32
    %119 = vector.broadcast %cst_44 : f32 to vector<8x128xf32>
    %120 = arith.mulf %119, %118 : vector<8x128xf32>
    %cst_45 = arith.constant 5.000000e-01 : f32
    %121 = vector.broadcast %cst_45 : f32 to vector<8x128xf32>
    %122 = arith.addf %120, %121 : vector<8x128xf32>
    %123 = arith.mulf %112, %83 : vector<8x128xf32>
    %124 = arith.mulf %104, %114 : vector<8x128xf32>
    %125 = arith.addf %123, %124 : vector<8x128xf32>
    %126 = math.tanh %125 : vector<8x128xf32>
    %127 = arith.mulf %122, %126 : vector<8x128xf32>
    %128 = arith.index_cast %c2_i32 : i32 to index
    %c0_46 = arith.constant 0 : index
    %c0_47 = arith.constant 0 : index
    %129 = vector.load %arg9[%128, %c0_46, %c0_47] : memref<8x8x128xf32, #tpu.memory_space<vmem>>, vector<1x8x128xf32>
    %130 = vector.shape_cast %129 : vector<1x8x128xf32> to vector<8x128xf32>
    %131 = vector.shape_cast %127 : vector<8x128xf32> to vector<1x8x128xf32>
    tpu.vector_store %arg9[%128, %c0_46, %c0_47], %131 {strides = array<i32>} : memref<8x8x128xf32, #tpu.memory_space<vmem>>, vector<1x8x128xf32>,
    %c3_i32 = arith.constant 3 : i32
    %132 = arith.index_cast %c3_i32 : i32 to index
    %c0_48 = arith.constant 0 : index
    %c0_49 = arith.constant 0 : index
    %133 = vector.load %arg2[%132, %c0_48, %c0_49] : memref<8x8x512xbf16, #tpu.memory_space<vmem>>, vector<1x8x512xbf16>
    %134 = vector.shape_cast %133 : vector<1x8x512xbf16> to vector<8x512xbf16>
    %135 = arith.extf %134 : vector<8x512xbf16> to vector<8x512xf32>
    %136 = arith.truncf %127 : vector<8x128xf32> to vector<8x128xbf16>
    %cst_50 = arith.constant dense<0.000000e+00> : vector<8x512xf32>
    %137 = tpu.matmul %136, %3, %cst_50 {dimension_numbers = #tpu.dot_dimension_numbers<[1], [0], [0], [1], [0, 0, 1, 1], [], []>} : vector<8x128xbf16>, vector<128x512xbf16>, vector<8x512xf32> -> vector<8x512xf32>
    %138 = arith.addf %135, %137 : vector<8x512xf32>
    %139 = vector.extract_strided_slice %138 {offsets = [0, 0], sizes = [8, 128], strides = [1, 1]} : vector<8x512xf32> to vector<8x128xf32>
    %cst_51 = arith.constant 5.000000e-01 : f32
    %140 = vector.broadcast %cst_51 : f32 to vector<8x128xf32>
    %141 = arith.mulf %140, %139 : vector<8x128xf32>
    %142 = math.tanh %141 : vector<8x128xf32>
    %cst_52 = arith.constant 5.000000e-01 : f32
    %143 = vector.broadcast %cst_52 : f32 to vector<8x128xf32>
    %144 = arith.mulf %143, %142 : vector<8x128xf32>
    %cst_53 = arith.constant 5.000000e-01 : f32
    %145 = vector.broadcast %cst_53 : f32 to vector<8x128xf32>
    %146 = arith.addf %144, %145 : vector<8x128xf32>
    %147 = vector.extract_strided_slice %138 {offsets = [0, 128], sizes = [8, 128], strides = [1, 1]} : vector<8x512xf32> to vector<8x128xf32>
    %cst_54 = arith.constant 5.000000e-01 : f32
    %148 = vector.broadcast %cst_54 : f32 to vector<8x128xf32>
    %149 = arith.mulf %148, %147 : vector<8x128xf32>
    %150 = math.tanh %149 : vector<8x128xf32>
    %cst_55 = arith.constant 5.000000e-01 : f32
    %151 = vector.broadcast %cst_55 : f32 to vector<8x128xf32>
    %152 = arith.mulf %151, %150 : vector<8x128xf32>
    %cst_56 = arith.constant 5.000000e-01 : f32
    %153 = vector.broadcast %cst_56 : f32 to vector<8x128xf32>
    %154 = arith.addf %152, %153 : vector<8x128xf32>
    %155 = vector.extract_strided_slice %138 {offsets = [0, 256], sizes = [8, 128], strides = [1, 1]} : vector<8x512xf32> to vector<8x128xf32>
    %156 = math.tanh %155 : vector<8x128xf32>
    %157 = vector.extract_strided_slice %138 {offsets = [0, 384], sizes = [8, 128], strides = [1, 1]} : vector<8x512xf32> to vector<8x128xf32>
    %cst_57 = arith.constant 5.000000e-01 : f32
    %158 = vector.broadcast %cst_57 : f32 to vector<8x128xf32>
    %159 = arith.mulf %158, %157 : vector<8x128xf32>
    %160 = math.tanh %159 : vector<8x128xf32>
    %cst_58 = arith.constant 5.000000e-01 : f32
    %161 = vector.broadcast %cst_58 : f32 to vector<8x128xf32>
    %162 = arith.mulf %161, %160 : vector<8x128xf32>
    %cst_59 = arith.constant 5.000000e-01 : f32
    %163 = vector.broadcast %cst_59 : f32 to vector<8x128xf32>
    %164 = arith.addf %162, %163 : vector<8x128xf32>
    %165 = arith.mulf %154, %125 : vector<8x128xf32>
    %166 = arith.mulf %146, %156 : vector<8x128xf32>
    %167 = arith.addf %165, %166 : vector<8x128xf32>
    %168 = math.tanh %167 : vector<8x128xf32>
    %169 = arith.mulf %164, %168 : vector<8x128xf32>
    %170 = arith.index_cast %c3_i32 : i32 to index
    %c0_60 = arith.constant 0 : index
    %c0_61 = arith.constant 0 : index
    %171 = vector.load %arg9[%170, %c0_60, %c0_61] : memref<8x8x128xf32, #tpu.memory_space<vmem>>, vector<1x8x128xf32>
    %172 = vector.shape_cast %171 : vector<1x8x128xf32> to vector<8x128xf32>
    %173 = vector.shape_cast %169 : vector<8x128xf32> to vector<1x8x128xf32>
    tpu.vector_store %arg9[%170, %c0_60, %c0_61], %173 {strides = array<i32>} : memref<8x8x128xf32, #tpu.memory_space<vmem>>, vector<1x8x128xf32>,
    %c4_i32 = arith.constant 4 : i32
    %174 = arith.index_cast %c4_i32 : i32 to index
    %c0_62 = arith.constant 0 : index
    %c0_63 = arith.constant 0 : index
    %175 = vector.load %arg2[%174, %c0_62, %c0_63] : memref<8x8x512xbf16, #tpu.memory_space<vmem>>, vector<1x8x512xbf16>
    %176 = vector.shape_cast %175 : vector<1x8x512xbf16> to vector<8x512xbf16>
    %177 = arith.extf %176 : vector<8x512xbf16> to vector<8x512xf32>
    %178 = arith.truncf %169 : vector<8x128xf32> to vector<8x128xbf16>
    %cst_64 = arith.constant dense<0.000000e+00> : vector<8x512xf32>
    %179 = tpu.matmul %178, %3, %cst_64 {dimension_numbers = #tpu.dot_dimension_numbers<[1], [0], [0], [1], [0, 0, 1, 1], [], []>} : vector<8x128xbf16>, vector<128x512xbf16>, vector<8x512xf32> -> vector<8x512xf32>
    %180 = arith.addf %177, %179 : vector<8x512xf32>
    %181 = vector.extract_strided_slice %180 {offsets = [0, 0], sizes = [8, 128], strides = [1, 1]} : vector<8x512xf32> to vector<8x128xf32>
    %cst_65 = arith.constant 5.000000e-01 : f32
    %182 = vector.broadcast %cst_65 : f32 to vector<8x128xf32>
    %183 = arith.mulf %182, %181 : vector<8x128xf32>
    %184 = math.tanh %183 : vector<8x128xf32>
    %cst_66 = arith.constant 5.000000e-01 : f32
    %185 = vector.broadcast %cst_66 : f32 to vector<8x128xf32>
    %186 = arith.mulf %185, %184 : vector<8x128xf32>
    %cst_67 = arith.constant 5.000000e-01 : f32
    %187 = vector.broadcast %cst_67 : f32 to vector<8x128xf32>
    %188 = arith.addf %186, %187 : vector<8x128xf32>
    %189 = vector.extract_strided_slice %180 {offsets = [0, 128], sizes = [8, 128], strides = [1, 1]} : vector<8x512xf32> to vector<8x128xf32>
    %cst_68 = arith.constant 5.000000e-01 : f32
    %190 = vector.broadcast %cst_68 : f32 to vector<8x128xf32>
    %191 = arith.mulf %190, %189 : vector<8x128xf32>
    %192 = math.tanh %191 : vector<8x128xf32>
    %cst_69 = arith.constant 5.000000e-01 : f32
    %193 = vector.broadcast %cst_69 : f32 to vector<8x128xf32>
    %194 = arith.mulf %193, %192 : vector<8x128xf32>
    %cst_70 = arith.constant 5.000000e-01 : f32
    %195 = vector.broadcast %cst_70 : f32 to vector<8x128xf32>
    %196 = arith.addf %194, %195 : vector<8x128xf32>
    %197 = vector.extract_strided_slice %180 {offsets = [0, 256], sizes = [8, 128], strides = [1, 1]} : vector<8x512xf32> to vector<8x128xf32>
    %198 = math.tanh %197 : vector<8x128xf32>
    %199 = vector.extract_strided_slice %180 {offsets = [0, 384], sizes = [8, 128], strides = [1, 1]} : vector<8x512xf32> to vector<8x128xf32>
    %cst_71 = arith.constant 5.000000e-01 : f32
    %200 = vector.broadcast %cst_71 : f32 to vector<8x128xf32>
    %201 = arith.mulf %200, %199 : vector<8x128xf32>
    %202 = math.tanh %201 : vector<8x128xf32>
    %cst_72 = arith.constant 5.000000e-01 : f32
    %203 = vector.broadcast %cst_72 : f32 to vector<8x128xf32>
    %204 = arith.mulf %203, %202 : vector<8x128xf32>
    %cst_73 = arith.constant 5.000000e-01 : f32
    %205 = vector.broadcast %cst_73 : f32 to vector<8x128xf32>
    %206 = arith.addf %204, %205 : vector<8x128xf32>
    %207 = arith.mulf %196, %167 : vector<8x128xf32>
    %208 = arith.mulf %188, %198 : vector<8x128xf32>
    %209 = arith.addf %207, %208 : vector<8x128xf32>
    %210 = math.tanh %209 : vector<8x128xf32>
    %211 = arith.mulf %206, %210 : vector<8x128xf32>
    %212 = arith.index_cast %c4_i32 : i32 to index
    %c0_74 = arith.constant 0 : index
    %c0_75 = arith.constant 0 : index
    %213 = vector.load %arg9[%212, %c0_74, %c0_75] : memref<8x8x128xf32, #tpu.memory_space<vmem>>, vector<1x8x128xf32>
    %214 = vector.shape_cast %213 : vector<1x8x128xf32> to vector<8x128xf32>
    %215 = vector.shape_cast %211 : vector<8x128xf32> to vector<1x8x128xf32>
    tpu.vector_store %arg9[%212, %c0_74, %c0_75], %215 {strides = array<i32>} : memref<8x8x128xf32, #tpu.memory_space<vmem>>, vector<1x8x128xf32>,
    %c5_i32 = arith.constant 5 : i32
    %216 = arith.index_cast %c5_i32 : i32 to index
    %c0_76 = arith.constant 0 : index
    %c0_77 = arith.constant 0 : index
    %217 = vector.load %arg2[%216, %c0_76, %c0_77] : memref<8x8x512xbf16, #tpu.memory_space<vmem>>, vector<1x8x512xbf16>
    %218 = vector.shape_cast %217 : vector<1x8x512xbf16> to vector<8x512xbf16>
    %219 = arith.extf %218 : vector<8x512xbf16> to vector<8x512xf32>
    %220 = arith.truncf %211 : vector<8x128xf32> to vector<8x128xbf16>
    %cst_78 = arith.constant dense<0.000000e+00> : vector<8x512xf32>
    %221 = tpu.matmul %220, %3, %cst_78 {dimension_numbers = #tpu.dot_dimension_numbers<[1], [0], [0], [1], [0, 0, 1, 1], [], []>} : vector<8x128xbf16>, vector<128x512xbf16>, vector<8x512xf32> -> vector<8x512xf32>
    %222 = arith.addf %219, %221 : vector<8x512xf32>
    %223 = vector.extract_strided_slice %222 {offsets = [0, 0], sizes = [8, 128], strides = [1, 1]} : vector<8x512xf32> to vector<8x128xf32>
    %cst_79 = arith.constant 5.000000e-01 : f32
    %224 = vector.broadcast %cst_79 : f32 to vector<8x128xf32>
    %225 = arith.mulf %224, %223 : vector<8x128xf32>
    %226 = math.tanh %225 : vector<8x128xf32>
    %cst_80 = arith.constant 5.000000e-01 : f32
    %227 = vector.broadcast %cst_80 : f32 to vector<8x128xf32>
    %228 = arith.mulf %227, %226 : vector<8x128xf32>
    %cst_81 = arith.constant 5.000000e-01 : f32
    %229 = vector.broadcast %cst_81 : f32 to vector<8x128xf32>
    %230 = arith.addf %228, %229 : vector<8x128xf32>
    %231 = vector.extract_strided_slice %222 {offsets = [0, 128], sizes = [8, 128], strides = [1, 1]} : vector<8x512xf32> to vector<8x128xf32>
    %cst_82 = arith.constant 5.000000e-01 : f32
    %232 = vector.broadcast %cst_82 : f32 to vector<8x128xf32>
    %233 = arith.mulf %232, %231 : vector<8x128xf32>
    %234 = math.tanh %233 : vector<8x128xf32>
    %cst_83 = arith.constant 5.000000e-01 : f32
    %235 = vector.broadcast %cst_83 : f32 to vector<8x128xf32>
    %236 = arith.mulf %235, %234 : vector<8x128xf32>
    %cst_84 = arith.constant 5.000000e-01 : f32
    %237 = vector.broadcast %cst_84 : f32 to vector<8x128xf32>
    %238 = arith.addf %236, %237 : vector<8x128xf32>
    %239 = vector.extract_strided_slice %222 {offsets = [0, 256], sizes = [8, 128], strides = [1, 1]} : vector<8x512xf32> to vector<8x128xf32>
    %240 = math.tanh %239 : vector<8x128xf32>
    %241 = vector.extract_strided_slice %222 {offsets = [0, 384], sizes = [8, 128], strides = [1, 1]} : vector<8x512xf32> to vector<8x128xf32>
    %cst_85 = arith.constant 5.000000e-01 : f32
    %242 = vector.broadcast %cst_85 : f32 to vector<8x128xf32>
    %243 = arith.mulf %242, %241 : vector<8x128xf32>
    %244 = math.tanh %243 : vector<8x128xf32>
    %cst_86 = arith.constant 5.000000e-01 : f32
    %245 = vector.broadcast %cst_86 : f32 to vector<8x128xf32>
    %246 = arith.mulf %245, %244 : vector<8x128xf32>
    %cst_87 = arith.constant 5.000000e-01 : f32
    %247 = vector.broadcast %cst_87 : f32 to vector<8x128xf32>
    %248 = arith.addf %246, %247 : vector<8x128xf32>
    %249 = arith.mulf %238, %209 : vector<8x128xf32>
    %250 = arith.mulf %230, %240 : vector<8x128xf32>
    %251 = arith.addf %249, %250 : vector<8x128xf32>
    %252 = math.tanh %251 : vector<8x128xf32>
    %253 = arith.mulf %248, %252 : vector<8x128xf32>
    %254 = arith.index_cast %c5_i32 : i32 to index
    %c0_88 = arith.constant 0 : index
    %c0_89 = arith.constant 0 : index
    %255 = vector.load %arg9[%254, %c0_88, %c0_89] : memref<8x8x128xf32, #tpu.memory_space<vmem>>, vector<1x8x128xf32>
    %256 = vector.shape_cast %255 : vector<1x8x128xf32> to vector<8x128xf32>
    %257 = vector.shape_cast %253 : vector<8x128xf32> to vector<1x8x128xf32>
    tpu.vector_store %arg9[%254, %c0_88, %c0_89], %257 {strides = array<i32>} : memref<8x8x128xf32, #tpu.memory_space<vmem>>, vector<1x8x128xf32>,
    %c6_i32 = arith.constant 6 : i32
    %258 = arith.index_cast %c6_i32 : i32 to index
    %c0_90 = arith.constant 0 : index
    %c0_91 = arith.constant 0 : index
    %259 = vector.load %arg2[%258, %c0_90, %c0_91] : memref<8x8x512xbf16, #tpu.memory_space<vmem>>, vector<1x8x512xbf16>
    %260 = vector.shape_cast %259 : vector<1x8x512xbf16> to vector<8x512xbf16>
    %261 = arith.extf %260 : vector<8x512xbf16> to vector<8x512xf32>
    %262 = arith.truncf %253 : vector<8x128xf32> to vector<8x128xbf16>
    %cst_92 = arith.constant dense<0.000000e+00> : vector<8x512xf32>
    %263 = tpu.matmul %262, %3, %cst_92 {dimension_numbers = #tpu.dot_dimension_numbers<[1], [0], [0], [1], [0, 0, 1, 1], [], []>} : vector<8x128xbf16>, vector<128x512xbf16>, vector<8x512xf32> -> vector<8x512xf32>
    %264 = arith.addf %261, %263 : vector<8x512xf32>
    %265 = vector.extract_strided_slice %264 {offsets = [0, 0], sizes = [8, 128], strides = [1, 1]} : vector<8x512xf32> to vector<8x128xf32>
    %cst_93 = arith.constant 5.000000e-01 : f32
    %266 = vector.broadcast %cst_93 : f32 to vector<8x128xf32>
    %267 = arith.mulf %266, %265 : vector<8x128xf32>
    %268 = math.tanh %267 : vector<8x128xf32>
    %cst_94 = arith.constant 5.000000e-01 : f32
    %269 = vector.broadcast %cst_94 : f32 to vector<8x128xf32>
    %270 = arith.mulf %269, %268 : vector<8x128xf32>
    %cst_95 = arith.constant 5.000000e-01 : f32
    %271 = vector.broadcast %cst_95 : f32 to vector<8x128xf32>
    %272 = arith.addf %270, %271 : vector<8x128xf32>
    %273 = vector.extract_strided_slice %264 {offsets = [0, 128], sizes = [8, 128], strides = [1, 1]} : vector<8x512xf32> to vector<8x128xf32>
    %cst_96 = arith.constant 5.000000e-01 : f32
    %274 = vector.broadcast %cst_96 : f32 to vector<8x128xf32>
    %275 = arith.mulf %274, %273 : vector<8x128xf32>
    %276 = math.tanh %275 : vector<8x128xf32>
    %cst_97 = arith.constant 5.000000e-01 : f32
    %277 = vector.broadcast %cst_97 : f32 to vector<8x128xf32>
    %278 = arith.mulf %277, %276 : vector<8x128xf32>
    %cst_98 = arith.constant 5.000000e-01 : f32
    %279 = vector.broadcast %cst_98 : f32 to vector<8x128xf32>
    %280 = arith.addf %278, %279 : vector<8x128xf32>
    %281 = vector.extract_strided_slice %264 {offsets = [0, 256], sizes = [8, 128], strides = [1, 1]} : vector<8x512xf32> to vector<8x128xf32>
    %282 = math.tanh %281 : vector<8x128xf32>
    %283 = vector.extract_strided_slice %264 {offsets = [0, 384], sizes = [8, 128], strides = [1, 1]} : vector<8x512xf32> to vector<8x128xf32>
    %cst_99 = arith.constant 5.000000e-01 : f32
    %284 = vector.broadcast %cst_99 : f32 to vector<8x128xf32>
    %285 = arith.mulf %284, %283 : vector<8x128xf32>
    %286 = math.tanh %285 : vector<8x128xf32>
    %cst_100 = arith.constant 5.000000e-01 : f32
    %287 = vector.broadcast %cst_100 : f32 to vector<8x128xf32>
    %288 = arith.mulf %287, %286 : vector<8x128xf32>
    %cst_101 = arith.constant 5.000000e-01 : f32
    %289 = vector.broadcast %cst_101 : f32 to vector<8x128xf32>
    %290 = arith.addf %288, %289 : vector<8x128xf32>
    %291 = arith.mulf %280, %251 : vector<8x128xf32>
    %292 = arith.mulf %272, %282 : vector<8x128xf32>
    %293 = arith.addf %291, %292 : vector<8x128xf32>
    %294 = math.tanh %293 : vector<8x128xf32>
    %295 = arith.mulf %290, %294 : vector<8x128xf32>
    %296 = arith.index_cast %c6_i32 : i32 to index
    %c0_102 = arith.constant 0 : index
    %c0_103 = arith.constant 0 : index
    %297 = vector.load %arg9[%296, %c0_102, %c0_103] : memref<8x8x128xf32, #tpu.memory_space<vmem>>, vector<1x8x128xf32>
    %298 = vector.shape_cast %297 : vector<1x8x128xf32> to vector<8x128xf32>
    %299 = vector.shape_cast %295 : vector<8x128xf32> to vector<1x8x128xf32>
    tpu.vector_store %arg9[%296, %c0_102, %c0_103], %299 {strides = array<i32>} : memref<8x8x128xf32, #tpu.memory_space<vmem>>, vector<1x8x128xf32>,
    %c7_i32 = arith.constant 7 : i32
    %300 = arith.index_cast %c7_i32 : i32 to index
    %c0_104 = arith.constant 0 : index
    %c0_105 = arith.constant 0 : index
    %301 = vector.load %arg2[%300, %c0_104, %c0_105] : memref<8x8x512xbf16, #tpu.memory_space<vmem>>, vector<1x8x512xbf16>
    %302 = vector.shape_cast %301 : vector<1x8x512xbf16> to vector<8x512xbf16>
    %303 = arith.extf %302 : vector<8x512xbf16> to vector<8x512xf32>
    %304 = arith.truncf %295 : vector<8x128xf32> to vector<8x128xbf16>
    %cst_106 = arith.constant dense<0.000000e+00> : vector<8x512xf32>
    %305 = tpu.matmul %304, %3, %cst_106 {dimension_numbers = #tpu.dot_dimension_numbers<[1], [0], [0], [1], [0, 0, 1, 1], [], []>} : vector<8x128xbf16>, vector<128x512xbf16>, vector<8x512xf32> -> vector<8x512xf32>
    %306 = arith.addf %303, %305 : vector<8x512xf32>
    %307 = vector.extract_strided_slice %306 {offsets = [0, 0], sizes = [8, 128], strides = [1, 1]} : vector<8x512xf32> to vector<8x128xf32>
    %cst_107 = arith.constant 5.000000e-01 : f32
    %308 = vector.broadcast %cst_107 : f32 to vector<8x128xf32>
    %309 = arith.mulf %308, %307 : vector<8x128xf32>
    %310 = math.tanh %309 : vector<8x128xf32>
    %cst_108 = arith.constant 5.000000e-01 : f32
    %311 = vector.broadcast %cst_108 : f32 to vector<8x128xf32>
    %312 = arith.mulf %311, %310 : vector<8x128xf32>
    %cst_109 = arith.constant 5.000000e-01 : f32
    %313 = vector.broadcast %cst_109 : f32 to vector<8x128xf32>
    %314 = arith.addf %312, %313 : vector<8x128xf32>
    %315 = vector.extract_strided_slice %306 {offsets = [0, 128], sizes = [8, 128], strides = [1, 1]} : vector<8x512xf32> to vector<8x128xf32>
    %cst_110 = arith.constant 5.000000e-01 : f32
    %316 = vector.broadcast %cst_110 : f32 to vector<8x128xf32>
    %317 = arith.mulf %316, %315 : vector<8x128xf32>
    %318 = math.tanh %317 : vector<8x128xf32>
    %cst_111 = arith.constant 5.000000e-01 : f32
    %319 = vector.broadcast %cst_111 : f32 to vector<8x128xf32>
    %320 = arith.mulf %319, %318 : vector<8x128xf32>
    %cst_112 = arith.constant 5.000000e-01 : f32
    %321 = vector.broadcast %cst_112 : f32 to vector<8x128xf32>
    %322 = arith.addf %320, %321 : vector<8x128xf32>
    %323 = vector.extract_strided_slice %306 {offsets = [0, 256], sizes = [8, 128], strides = [1, 1]} : vector<8x512xf32> to vector<8x128xf32>
    %324 = math.tanh %323 : vector<8x128xf32>
    %325 = vector.extract_strided_slice %306 {offsets = [0, 384], sizes = [8, 128], strides = [1, 1]} : vector<8x512xf32> to vector<8x128xf32>
    %cst_113 = arith.constant 5.000000e-01 : f32
    %326 = vector.broadcast %cst_113 : f32 to vector<8x128xf32>
    %327 = arith.mulf %326, %325 : vector<8x128xf32>
    %328 = math.tanh %327 : vector<8x128xf32>
    %cst_114 = arith.constant 5.000000e-01 : f32
    %329 = vector.broadcast %cst_114 : f32 to vector<8x128xf32>
    %330 = arith.mulf %329, %328 : vector<8x128xf32>
    %cst_115 = arith.constant 5.000000e-01 : f32
    %331 = vector.broadcast %cst_115 : f32 to vector<8x128xf32>
    %332 = arith.addf %330, %331 : vector<8x128xf32>
    %333 = arith.mulf %322, %293 : vector<8x128xf32>
    %334 = arith.mulf %314, %324 : vector<8x128xf32>
    %335 = arith.addf %333, %334 : vector<8x128xf32>
    %336 = math.tanh %335 : vector<8x128xf32>
    %337 = arith.mulf %332, %336 : vector<8x128xf32>
    %338 = arith.index_cast %c7_i32 : i32 to index
    %c0_116 = arith.constant 0 : index
    %c0_117 = arith.constant 0 : index
    %339 = vector.load %arg9[%338, %c0_116, %c0_117] : memref<8x8x128xf32, #tpu.memory_space<vmem>>, vector<1x8x128xf32>
    %340 = vector.shape_cast %339 : vector<1x8x128xf32> to vector<8x128xf32>
    %341 = vector.shape_cast %337 : vector<8x128xf32> to vector<1x8x128xf32>
    tpu.vector_store %arg9[%338, %c0_116, %c0_117], %341 {strides = array<i32>} : memref<8x8x128xf32, #tpu.memory_space<vmem>>, vector<1x8x128xf32>,
    %c8_i32 = arith.constant 8 : i32
    %c0_118 = arith.constant 0 : index
    %c0_119 = arith.constant 0 : index
    %342 = vector.load %arg7[%c0_118, %c0_119] : memref<8x128xf32, #tpu.memory_space<vmem>>, vector<8x128xf32>
    tpu.vector_store %arg7[%c0_118, %c0_119], %337 {strides = array<i32>} : memref<8x128xf32, #tpu.memory_space<vmem>>, vector<8x128xf32>,
    %c0_120 = arith.constant 0 : index
    %c0_121 = arith.constant 0 : index
    %343 = vector.load %arg8[%c0_120, %c0_121] : memref<8x128xf32, #tpu.memory_space<vmem>>, vector<8x128xf32>
    tpu.vector_store %arg8[%c0_120, %c0_121], %335 {strides = array<i32>} : memref<8x128xf32, #tpu.memory_space<vmem>>, vector<8x128xf32>,
    %c0_122 = arith.constant 0 : index
    %c0_123 = arith.constant 0 : index
    %c0_124 = arith.constant 0 : index
    %344 = vector.load %arg9[%c0_122, %c0_123, %c0_124] : memref<8x8x128xf32, #tpu.memory_space<vmem>>, vector<8x8x128xf32>
    %345 = vector.shape_cast %344 : vector<8x8x128xf32> to vector<64x128xf32>
    %346 = arith.truncf %345 : vector<64x128xf32> to vector<64x128xbf16>
    %c0_125 = arith.constant 0 : index
    %c0_126 = arith.constant 0 : index
    %347 = vector.load %arg4[%c0_125, %c0_126] : memref<128x128xbf16, #tpu.memory_space<vmem>>, vector<128x128xbf16>
    %cst_127 = arith.constant dense<0.000000e+00> : vector<64x128xf32>
    %348 = tpu.matmul %346, %347, %cst_127 {dimension_numbers = #tpu.dot_dimension_numbers<[1], [0], [0], [1], [0, 0, 1, 1], [], []>} : vector<64x128xbf16>, vector<128x128xbf16>, vector<64x128xf32> -> vector<64x128xf32>
    %c0_128 = arith.constant 0 : index
    %c0_129 = arith.constant 0 : index
    %349 = vector.load %arg5[%c0_128, %c0_129] : memref<1x128xf32, #tpu.memory_space<vmem>>, vector<1x128xf32>
    %350 = vector.broadcast %349 : vector<1x128xf32> to vector<64x128xf32>
    %351 = arith.addf %348, %350 : vector<64x128xf32>
    %352 = vector.shape_cast %351 : vector<64x128xf32> to vector<8x8x128xf32>
    %c0_130 = arith.constant 0 : index
    %c0_131 = arith.constant 0 : index
    %c0_132 = arith.constant 0 : index
    %353 = vector.load %arg6[%c0_130, %c0_131, %c0_132] : memref<8x8x128xf32, #tpu.memory_space<vmem>>, vector<8x8x128xf32>
    tpu.vector_store %arg6[%c0_130, %c0_131, %c0_132], %352 {strides = array<i32>} : memref<8x8x128xf32, #tpu.memory_space<vmem>>, vector<8x8x128xf32>,
    return
  }
  func.func @transform_0(%arg0: i32, %arg1: i32) -> (i32, i32, i32) {
    %c0_i32 = arith.constant 0 : i32
    %c0_i32_0 = arith.constant 0 : i32
    return %arg1, %arg0, %c0_i32 : i32, i32, i32
  }
  func.func @transform_1(%arg0: i32, %arg1: i32) -> (i32, i32) {
    %c0_i32 = arith.constant 0 : i32
    %c0_i32_0 = arith.constant 0 : i32
    %c0_i32_1 = arith.constant 0 : i32
    return %c0_i32, %c0_i32_0 : i32, i32
  }
  func.func @transform_2(%arg0: i32, %arg1: i32) -> (i32, i32) {
    %c0_i32 = arith.constant 0 : i32
    %c0_i32_0 = arith.constant 0 : i32
    %c0_i32_1 = arith.constant 0 : i32
    return %c0_i32, %c0_i32_0 : i32, i32
  }
  func.func @transform_3(%arg0: i32, %arg1: i32) -> (i32, i32) {
    %c0_i32 = arith.constant 0 : i32
    %c0_i32_0 = arith.constant 0 : i32
    %c0_i32_1 = arith.constant 0 : i32
    return %c0_i32, %c0_i32_0 : i32, i32
  }
  func.func @transform_4(%arg0: i32, %arg1: i32) -> (i32, i32, i32) {
    %c0_i32 = arith.constant 0 : i32
    %c0_i32_0 = arith.constant 0 : i32
    return %arg1, %arg0, %c0_i32 : i32, i32, i32
  }
}

</mosaic_0001>

<bundles_post_ra>
// kernel: tpu_custom_call.1
= control target key start
LH: loop header
LB: loop body
LE: loop exit
PB: predicated region body
PF: predicated region fallthrough
CT: control target
= control target key end

     0   :  { %9 = vsyncpa [#allocation6], 0  ;;  %s1889_s0 = inlined_call_operand.hbm [shape: bf16[8,8,512], index: 0, kind: input, shape index: {}]   ;;  %s1890_s1 = inlined_call_operand.hbm [shape: bf16[128,512], index: 1, kind: input, shape index: {}]   ;;  %s1891_s2 = inlined_call_operand.hbm [shape: bf16[128,128], index: 2, kind: input, shape index: {}]   ;;  %s1892_s3 = inlined_call_operand.vmem [shape: f32[1,128], index: 3, kind: input, shape index: {}]   ;;  %s1893_s4 = inlined_call_operand.hbm [shape: f32[8,8,128], index: 4, kind: output, shape index: {}]  }
   0x1   :  { %10 = vsyncpa [#allocation9], 0 }
   0x2   :  { %11 = vsyncpa [#allocation7], 0  ;;  %s29_s17 = sshll.u32 %s1890_s1, 4  ;;  %s1468_s18 = smov [#allocation8]   ;;  %s30_s17 = int_to_ptr.hbm [resolvable:$true] %s29_s17 }
   0x3   :  { %s31_s19 = sshll.u32 %s1468_s18, 4  ;;  %s16_s22 = sshll.u32 %s1889_s0, 4  ;;  %s32_s19 = int_to_ptr.vmem [resolvable:$true] %s31_s19  ;;  %s17_s22 = int_to_ptr.hbm [resolvable:$true] %s16_s22 }
   0x4   :  { %s1469_s23 = smov 256   ;;  %s1470_s24 = smov 16  }
   0x5   :  { %37 = dma.hbm_to_vmem [thread:$0]  %s30_s17, 4096, %s32_s19, [#allocation9], %s1469_s23, %s1469_s23, %s1470_s24  }
   0x6   :  { %s1471_s25 = smov [#allocation5]   ;;  %s42_s29 = sshll.u32 %s1891_s2, 4  ;;  %s43_s29 = int_to_ptr.hbm [resolvable:$true] %s42_s29 }
   0x7   :  { %s18_s26 = sshll.u32 %s1471_s25, 4  ;;  %s1472_s1 = smov [#allocation10]   ;;  %s19_s26 = int_to_ptr.vmem [resolvable:$true] %s18_s26 }
   0x8   :  { %24 = dma.hbm_to_vmem [thread:$0]  %s17_s22, 2048, %s19_s26, [#allocation6], %s1469_s23, %s1469_s23, %s1470_s24  }
   0x9   :  { %s44_s30 = sshll.u32 %s1472_s1, 4  ;;  %s1473_s5 = smov 64   ;;  %s45_s30 = int_to_ptr.vmem [resolvable:$true] %s44_s30 }
   0xa   :  { %s1474_s6 = smov 4  }
   0xb   :  { %50 = dma.hbm_to_vmem [thread:$0]  %s43_s29, 1024, %s45_s30, [#allocation9], %s1473_s5, %s1473_s5, %s1474_s6  }
   0xc   :  { %1462 = dma.done.wait [#allocation6], 2048  }
   0xd   :  { %1463 = vsyncadd [#allocation6], 4294965248 }
   0xe   :  { %1464 = dma.done.wait [#allocation9], 5120  }
   0xf   :  { %1465 = vsyncadd [#allocation9], 4294962176  ;;  %v1188_v0 = vld [vmem:[#allocation8 + $0xe0] sm:$0xf]  ;;  %v1264_v1 = vld [vmem:[#allocation8 + $0xec] sm:$0xf0] }
  0x10   :  { %v1172_v2 = vld [vmem:[#allocation8 + $0xc0] sm:$0xf]  ;;  %v1513_v3 = vor.u32 %v1264_v1, %v1188_v0  ;;  %v1260_v4 = vld [vmem:[#allocation8 + $0xcc] sm:$0xf0]  ;;  %v1196_v5 = vld [vmem:[#allocation8 + $0xe8] sm:$0xf] }
  0x11   :  { %v1516_v6 = vor.u32 %v1260_v4, %v1172_v2  ;;  %v1156_v7 = vld [vmem:[#allocation8 + $0xa0] sm:$0xf]  ;;  %v1265_v8 = vld [vmem:[#allocation8 + $0xf4] sm:$0xf0]  ;;  %v1256_v9 = vld [vmem:[#allocation8 + $0xac] sm:$0xf0] }
  0x12   :  { %272 = vmatpush.bf16.msra.mxu1 %v1513_v3  ;;  %439 = vmatpush.bf16.msra.mxu0 %v1513_v3  ;;  %v1519_v10 = vor.u32 %v1265_v8, %v1196_v5  ;;  %v1180_v11 = vld [vmem:[#allocation8 + $0xc8] sm:$0xf]  ;;  %v1261_v12 = vld [vmem:[#allocation8 + $0xd4] sm:$0xf0]  ;;  %v1525_v15 = vor.u32 %v1256_v9, %v1156_v7  ;;  %v1263_v17 = vld [vmem:[#allocation8 + $0xec] sm:$0xf] }
  0x13   :  { %v1522_v13 = vor.u32 %v1261_v12, %v1180_v11  ;;  %v1164_v14 = vld [vmem:[#allocation8 + $0xa8] sm:$0xf]  ;;  %v1257_v16 = vld [vmem:[#allocation8 + $0xb4] sm:$0xf0]  ;;  %v1198_v18 = vld [vmem:[#allocation8 + $0xf8] sm:$0xf0] }
  0x14   :  { %298 = vmatpush.bf16.msra.mxu2 %v1519_v10  ;;  %v1140_v19 = vld [vmem:[#allocation8 + $0x80] sm:$0xf]  ;;  %v1252_v20 = vld [vmem:[#allocation8 + $0x8c] sm:$0xf0]  ;;  %v1528_v21 = vor.u32 %v1263_v17, %v1198_v18  ;;  %v1531_v22 = vor.u32 %v1257_v16, %v1164_v14  ;;  %v1259_v23 = vld [vmem:[#allocation8 + $0xcc] sm:$0xf] }
  0x15   :  { %v1182_v24 = vld [vmem:[#allocation8 + $0xd8] sm:$0xf0]  ;;  %v1535_v25 = vor.u32 %v1252_v20, %v1140_v19  ;;  %v1124_v26 = vld [vmem:[#allocation8 + $0x60] sm:$0xf]  ;;  %v1148_v27 = vld [vmem:[#allocation8 + $0x88] sm:$0xf] }
  0x16   :  { %273 = vmatpush.bf16.msra.mxu1 %v1516_v6  ;;  %440 = vmatpush.bf16.msra.mxu0 %v1516_v6  ;;  %v1253_v28 = vld [vmem:[#allocation8 + $0x94] sm:$0xf0]  ;;  %v1537_v29 = vor.u32 %v1259_v23, %v1182_v24  ;;  %v1248_v30 = vld [vmem:[#allocation8 + $0x6c] sm:$0xf0]  ;;  %v1255_v31 = vld [vmem:[#allocation8 + $0xac] sm:$0xf] }
  0x17   :  { %311 = vmatpush.bf16.msra.mxu3 %v1528_v21  ;;  %v1166_v32 = vld [vmem:[#allocation8 + $0xb8] sm:$0xf0]  ;;  %v1541_v33 = vor.u32 %v1253_v28, %v1148_v27  ;;  %v1132_v34 = vld [vmem:[#allocation8 + $0x68] sm:$0xf]  ;;  %v1547_v36 = vor.u32 %v1248_v30, %v1124_v26  ;;  %v1249_v37 = vld [vmem:[#allocation8 + $0x74] sm:$0xf0] }
  0x18   :  { %299 = vmatpush.bf16.msra.mxu2 %v1522_v13  ;;  %v1544_v35 = vor.u32 %v1255_v31, %v1166_v32  ;;  %v1251_v38 = vld [vmem:[#allocation8 + $0x8c] sm:$0xf]  ;;  %v1150_v39 = vld [vmem:[#allocation8 + $0x98] sm:$0xf0]  ;;  %v1108_v40 = vld [vmem:[#allocation8 + $0x40] sm:$0xf]  ;;  %v1551_v42 = vor.u32 %v1249_v37, %v1132_v34 }
  0x19   :  { %v1244_v41 = vld [vmem:[#allocation8 + $0x4c] sm:$0xf0]  ;;  %v1116_v43 = vld [vmem:[#allocation8 + $0x48] sm:$0xf]  ;;  %v1245_v44 = vld [vmem:[#allocation8 + $0x54] sm:$0xf0]  ;;  %v1554_v45 = vor.u32 %v1251_v38, %v1150_v39 }
  0x1a   :  { %274 = vmatpush.bf16.msra.mxu1 %v1525_v15  ;;  %441 = vmatpush.bf16.msra.mxu0 %v1525_v15  ;;  %v1557_v46 = vor.u32 %v1244_v41, %v1108_v40  ;;  %v1247_v47 = vld [vmem:[#allocation8 + $0x6c] sm:$0xf]  ;;  %v1134_v48 = vld [vmem:[#allocation8 + $0x78] sm:$0xf0]  ;;  %v1092_v49 = vld [vmem:[#allocation8 + $0x20] sm:$0xf]  ;;  %v1561_v51 = vor.u32 %v1245_v44, %v1116_v43 }
  0x1b   :  { %312 = vmatpush.bf16.msra.mxu3 %v1537_v29  ;;  %v1240_v50 = vld [vmem:[#allocation8 + $0x2c] sm:$0xf0]  ;;  %v1100_v52 = vld [vmem:[#allocation8 + $0x28] sm:$0xf]  ;;  %v1564_v53 = vor.u32 %v1247_v47, %v1134_v48  ;;  %v1241_v55 = vld [vmem:[#allocation8 + $0x34] sm:$0xf0] }
  0x1c   :  { %300 = vmatpush.bf16.msra.mxu2 %v1531_v22  ;;  %v1567_v54 = vor.u32 %v1240_v50, %v1092_v49  ;;  %v1243_v56 = vld [vmem:[#allocation8 + $0x4c] sm:$0xf]  ;;  %v1118_v57 = vld [vmem:[#allocation8 + $0x58] sm:$0xf0]  ;;  %v1076_v58 = vld [vmem:[#allocation8] sm:$0xf]  ;;  %v1571_v62 = vor.u32 %v1241_v55, %v1100_v52 }
  0x1d   :  { %v1236_v59 = vld [vmem:[#allocation8 + $0xc] sm:$0xf0]  ;;  %v1262_v60 = vld [vmem:[#allocation8 + $0xe4] sm:$0xf]  ;;  %v1190_v61 = vld [vmem:[#allocation8 + $0xf0] sm:$0xf0]  ;;  %v1574_v63 = vor.u32 %v1243_v56, %v1118_v57 }
  0x1e   :  { %275 = vmatpush.bf16.msra.mxu1 %v1535_v25  ;;  %442 = vmatpush.bf16.msra.mxu0 %v1535_v25  ;;  %v1577_v0 = vor.u32 %v1236_v59, %v1076_v58  ;;  %v1084_v1 = vld [vmem:[#allocation8 + $0x8] sm:$0xf]  ;;  %v1237_v2 = vld [vmem:[#allocation8 + $0x14] sm:$0xf0]  ;;  %v1580_v4 = vor.u32 %v1262_v60, %v1190_v61  ;;  %v1239_v5 = vld [vmem:[#allocation8 + $0x2c] sm:$0xf] }
  0x1f   :  { %313 = vmatpush.bf16.msra.mxu3 %v1544_v35  ;;  %v1102_v7 = vld [vmem:[#allocation8 + $0x38] sm:$0xf0]  ;;  %v1258_v8 = vld [vmem:[#allocation8 + $0xc4] sm:$0xf]  ;;  %v1174_v9 = vld [vmem:[#allocation8 + $0xd0] sm:$0xf0]  ;;  %v1583_v11 = vor.u32 %v1237_v2, %v1084_v1 }
  0x20   :  { %301 = vmatpush.bf16.msra.mxu2 %v1541_v33  ;;  %v1587_v12 = vor.u32 %v1239_v5, %v1102_v7  ;;  %v1591_v14 = vor.u32 %v1258_v8, %v1174_v9  ;;  %v1235_v16 = vld [vmem:[#allocation8 + $0xc] sm:$0xf]  ;;  %v1086_v17 = vld [vmem:[#allocation8 + $0x18] sm:$0xf0]  ;;  %v1254_v18 = vld [vmem:[#allocation8 + $0xa4] sm:$0xf] }
  0x21   :  { %v1158_v19 = vld [vmem:[#allocation8 + $0xb0] sm:$0xf0]  ;;  %v1475_v20 = vmov 0.0|0.0   ;;  %v1596_v23 = vor.u32 %v1235_v16, %v1086_v17  ;;  %v1250_v26 = vld [vmem:[#allocation8 + $0x84] sm:$0xf]  ;;  %v106_v61 = vld [vmem:[#allocation5 + $0x8] sm:$0xff] }
  0x22   :  { %276 = vmatpush.bf16.msra.mxu1 %v1547_v36  ;;  %443 = vmatpush.bf16.msra.mxu0 %v1547_v36  ;;  %v1600_v24 = vor.u32 %v1254_v18, %v1158_v19  ;;  %v1142_v27 = vld [vmem:[#allocation8 + $0x90] sm:$0xf0]  ;;  %v1246_v30 = vld [vmem:[#allocation8 + $0x64] sm:$0xf]  ;;  %v110_v2 = vunpack.c.h.bf16 %v106_v61  ;;  %v109_v5 = vunpack.c.l.bf16 %v106_v61  ;;  %s1060_s10 = sshll.u32 %s1893_s4, 4  ;;  %s1477_s11 = smov 128   ;;  %s1061_s10 = int_to_ptr.hbm [resolvable:$true] %s1060_s10 }
  0x23   :  { %314 = vmatpush.bf16.msra.mxu3 %v1554_v45  ;;  %v1606_v28 = vor.u32 %v1250_v26, %v1142_v27  ;;  %v1126_v31 = vld [vmem:[#allocation8 + $0x70] sm:$0xf0]  ;;  %v1242_v34 = vld [vmem:[#allocation8 + $0x44] sm:$0xf]  ;;  %s1478_s12 = smov 8  }
  0x24   :  { %302 = vmatpush.bf16.msra.mxu2 %v1551_v42  ;;  %v1612_v32 = vor.u32 %v1246_v30, %v1126_v31  ;;  %v1110_v37 = vld [vmem:[#allocation8 + $0x50] sm:$0xf0]  ;;  %v1238_v39 = vld [vmem:[#allocation8 + $0x24] sm:$0xf] }
  0x25   :  { %v1618_v38 = vor.u32 %v1242_v34, %v1110_v37  ;;  %v1094_v40 = vld [vmem:[#allocation8 + $0x30] sm:$0xf0]  ;;  %v1234_v43 = vld [vmem:[#allocation8 + $0x4] sm:$0xf] }
  0x26   :  { %277 = vmatpush.bf16.msra.mxu1 %v1557_v46  ;;  %444 = vmatpush.bf16.msra.mxu0 %v1557_v46  ;;  %v1624_v41 = vor.u32 %v1238_v39, %v1094_v40  ;;  %v1078_v44 = vld [vmem:[#allocation8 + $0x10] sm:$0xf0]  ;;  %v105_v52 = vld [vmem:[#allocation5] sm:$0xff] }
  0x27   :  { %315 = vmatpush.bf16.msra.mxu3 %v1564_v53  ;;  %v1630_v47 = vor.u32 %v1234_v43, %v1078_v44  ;;  %v107_v56 = vunpack.c.l.bf16 %v105_v52  ;;  %v108_v1 = vunpack.c.h.bf16 %v105_v52 }
  0x28   :  { %303 = vmatpush.bf16.msra.mxu2 %v1561_v51 }
  0x2a   :  { %278 = vmatpush.bf16.msra.mxu1 %v1567_v54  ;;  %445 = vmatpush.bf16.msra.mxu0 %v1567_v54 }
  0x2b   :  { %316 = vmatpush.bf16.msra.mxu3 %v1574_v63 }
  0x2c   :  { %304 = vmatpush.bf16.msra.mxu2 %v1571_v62 }
  0x2e   :  { %279 = vmatpush.bf16.msra.mxu1 %v1577_v0  ;;  %446 = vmatpush.bf16.msra.mxu0 %v1577_v0 }
  0x2f   :  { %317 = vmatpush.bf16.msra.mxu3 %v1587_v12 }
  0x30   :  { %305 = vmatpush.bf16.msra.mxu2 %v1583_v11 }
  0x31   :  { %280 = vmatmul.bf16.vlgmr.msra.gmra.mxu1 %v1475_v20 }
  0x32   :  { %285 = vmatpush.bf16.msrb.mxu1 %v1580_v4  ;;  %523 = vmatpush.bf16.msrb.mxu0 %v1513_v3 }
  0x33   :  { %306 = vmatmul.bf16.vlgmr.msra.gmra.mxu2 %v1475_v20  ;;  %318 = vmatpush.bf16.msra.mxu3 %v1596_v23 }
  0x34   :  { %355 = vmatpush.bf16.msrb.mxu2 %v1513_v3 }
  0x36   :  { %286 = vmatpush.bf16.msrb.mxu1 %v1591_v14  ;;  %524 = vmatpush.bf16.msrb.mxu0 %v1516_v6 }
  0x37   :  { %394 = vmatpush.bf16.msrb.mxu3 %v1528_v21 }
  0x38   :  { %356 = vmatpush.bf16.msrb.mxu2 %v1516_v6  ;;  %319 = vmatmul.bf16.vlgmr.msra.gmra.mxu3 %v1475_v20 }
  0x3a   :  { %287 = vmatpush.bf16.msrb.mxu1 %v1600_v24  ;;  %525 = vmatpush.bf16.msrb.mxu0 %v1525_v15 }
  0x3b   :  { %395 = vmatpush.bf16.msrb.mxu3 %v1537_v29 }
  0x3c   :  { %357 = vmatpush.bf16.msrb.mxu2 %v1525_v15 }
  0x3e   :  { %288 = vmatpush.bf16.msrb.mxu1 %v1606_v28  ;;  %526 = vmatpush.bf16.msrb.mxu0 %v1535_v25 }
  0x3f   :  { %396 = vmatpush.bf16.msrb.mxu3 %v1544_v35 }
  0x40   :  { %358 = vmatpush.bf16.msrb.mxu2 %v1535_v25 }
  0x42   :  { %289 = vmatpush.bf16.msrb.mxu1 %v1612_v32  ;;  %527 = vmatpush.bf16.msrb.mxu0 %v1547_v36 }
  0x43   :  { %397 = vmatpush.bf16.msrb.mxu3 %v1554_v45 }
  0x44   :  { %359 = vmatpush.bf16.msrb.mxu2 %v1547_v36 }
  0x46   :  { %290 = vmatpush.bf16.msrb.mxu1 %v1618_v38  ;;  %528 = vmatpush.bf16.msrb.mxu0 %v1557_v46 }
  0x47   :  { %398 = vmatpush.bf16.msrb.mxu3 %v1564_v53 }
  0x48   :  { %360 = vmatpush.bf16.msrb.mxu2 %v1557_v46 }
  0x4a   :  { %291 = vmatpush.bf16.msrb.mxu1 %v1624_v41  ;;  %529 = vmatpush.bf16.msrb.mxu0 %v1567_v54 }
  0x4b   :  { %399 = vmatpush.bf16.msrb.mxu3 %v1574_v63 }
  0x4c   :  { %361 = vmatpush.bf16.msrb.mxu2 %v1567_v54 }
  0x4e   :  { %292 = vmatpush.bf16.msrb.mxu1 %v1630_v47  ;;  %530 = vmatpush.bf16.msrb.mxu0 %v1577_v0 }
  0x4f   :  { %400 = vmatpush.bf16.msrb.mxu3 %v1587_v12 }
  0x50   :  { %362 = vmatpush.bf16.msrb.mxu2 %v1577_v0 }
  0x51   :  { %293 = vmatmul.bf16.vlgmr.msrb.gmra.mxu1 %v1475_v20 }
  0x52   :  { %368 = vmatpush.bf16.msra.mxu1 %v1580_v4 }
  0x53   :  { %401 = vmatpush.bf16.msrb.mxu3 %v1596_v23 }
  0x54   :  { %381 = vmatpush.bf16.msra.mxu2 %v1519_v10 }
  0x56   :  { %369 = vmatpush.bf16.msra.mxu1 %v1591_v14 }
  0x57   :  { %478 = vmatpush.bf16.msra.mxu3 %v1528_v21 }
  0x58   :  { %382 = vmatpush.bf16.msra.mxu2 %v1522_v13 }
  0x5a   :  { %370 = vmatpush.bf16.msra.mxu1 %v1600_v24 }
  0x5b   :  { %479 = vmatpush.bf16.msra.mxu3 %v1537_v29 }
  0x5c   :  { %383 = vmatpush.bf16.msra.mxu2 %v1531_v22 }
  0x5e   :  { %371 = vmatpush.bf16.msra.mxu1 %v1606_v28 }
  0x5f   :  { %480 = vmatpush.bf16.msra.mxu3 %v1544_v35 }
  0x60   :  { %384 = vmatpush.bf16.msra.mxu2 %v1541_v33 }
  0x62   :  { %372 = vmatpush.bf16.msra.mxu1 %v1612_v32 }
  0x63   :  { %481 = vmatpush.bf16.msra.mxu3 %v1554_v45 }
  0x64   :  { %385 = vmatpush.bf16.msra.mxu2 %v1551_v42 }
  0x66   :  { %373 = vmatpush.bf16.msra.mxu1 %v1618_v38 }
  0x67   :  { %482 = vmatpush.bf16.msra.mxu3 %v1564_v53 }
  0x68   :  { %386 = vmatpush.bf16.msra.mxu2 %v1561_v51 }
  0x6a   :  { %374 = vmatpush.bf16.msra.mxu1 %v1624_v41 }
  0x6b   :  { %483 = vmatpush.bf16.msra.mxu3 %v1574_v63 }
  0x6c   :  { %387 = vmatpush.bf16.msra.mxu2 %v1571_v62 }
  0x6e   :  { %375 = vmatpush.bf16.msra.mxu1 %v1630_v47 }
  0x6f   :  { %484 = vmatpush.bf16.msra.mxu3 %v1587_v12 }
  0x70   :  { %388 = vmatpush.bf16.msra.mxu2 %v1583_v11 }
  0x72   :  { %452 = vmatpush.bf16.msrb.mxu1 %v1580_v4 }
  0x73   :  { %485 = vmatpush.bf16.msra.mxu3 %v1596_v23 }
  0x76   :  { %453 = vmatpush.bf16.msrb.mxu1 %v1591_v14 }
  0x7a   :  { %454 = vmatpush.bf16.msrb.mxu1 %v1600_v24 }
  0x7e   :  { %455 = vmatpush.bf16.msrb.mxu1 %v1606_v28 }
  0x82   :  { %456 = vmatpush.bf16.msrb.mxu1 %v1612_v32 }
  0x86   :  { %457 = vmatpush.bf16.msrb.mxu1 %v1618_v38 }
  0x8a   :  { %458 = vmatpush.bf16.msrb.mxu1 %v1624_v41 }
  0x8e   :  { %459 = vmatpush.bf16.msrb.mxu1 %v1630_v47 }
  0xae   :  { %v281_v48 = vpop.f32.mrf.mxu1 }
  0xaf   :  { %v324_v58 = vadd.f32 %v281_v48, %v107_v56  ;;  %v348_v56 = vld [vmem:[#allocation5 + $0x10] sm:$0xff] }
  0xb1   :  { %v328_v60 = vmul.f32 0.5, %v324_v58  ;;  %v351_v58 = vunpack.c.h.bf16 %v348_v56 }
  0xb3   :  { %1286 = vtanh.f32 %v328_v60 }
  0xb6   :  { %v283_v49 = vpop.f32.mrf.mxu1  ;;  %v307_v50 = vpop.f32.mrf.mxu2 }
  0xb7   :  { %v326_v16 = vadd.f32 %v307_v50, %v109_v5 }
  0xb9   :  { %v1287_v18 = vpop.eup %1286 }
  0xba   :  { %v330_v20 = vmul.f32 0.5, %v1287_v18 }
  0xbb   :  { %v320_v55 = vpop.f32.mrf.mxu3 }
  0xbc   :  { %v327_v9 = vadd.f32 %v320_v55, %v110_v2  ;;  %v331_v30 = vadd.f32 0.5, %v330_v20 }
  0xbe   :  { %v309_v57 = vpop.f32.mrf.mxu2  ;;  %v337_v19 = vmul.f32 0.5, %v327_v9  ;;  %v349_v9 = vld [vmem:[#allocation5 + $0x18] sm:$0xff] }
  0xbf   :  { %v353_v18 = vunpack.c.h.bf16 %v349_v9 }
  0xc3   :  { %v322_v59 = vpop.f32.mrf.mxu3 }
  0xc4   :  { %v350_v59 = vunpack.c.l.bf16 %v348_v56 }
  0xce   :  { %v294_v7 = vpop.f32.mrf.mxu1 }
  0xcf   :  { %v325_v8 = vadd.f32 %v294_v7, %v108_v1 }
  0xd1   :  { %v332_v17 = vmul.f32 0.5, %v325_v8 }
  0xd3   :  { %1288 = vtanh.f32 %v332_v17 }
  0xd4   :  { %1290 = vtanh.f32 %v326_v16 }
  0xd5   :  { %1292 = vtanh.f32 %v337_v19  ;;  %v352_v19 = vunpack.c.l.bf16 %v349_v9 }
  0xd6   :  { %v296_v26 = vpop.f32.mrf.mxu1 }
  0xd9   :  { %v1289_v27 = vpop.eup %1288 }
  0xda   :  { %v334_v31 = vmul.f32 0.5, %v1289_v27  ;;  %v1291_v34 = vpop.eup %1290 }
  0xdb   :  { %v1293_v39 = vpop.eup %1292  ;;  %v342_v40 = vmul.f32 %v1291_v34, %v331_v30 }
  0xdc   :  { %v335_v37 = vadd.f32 0.5, %v334_v31  ;;  %v339_v48 = vmul.f32 0.5, %v1293_v39 }
  0xde   :  { %v341_v43 = vmul.f32 0.0, %v335_v37  ;;  %v340_v49 = vadd.f32 0.5, %v339_v48 }
  0xe0   :  { %v1673_v44 = vadd.f32 %v342_v40, %v341_v43 }
  0xe2   :  { %1294 = vtanh.f32 %v1673_v44 }
  0xe8   :  { %v1295_v50 = vpop.eup %1294 }
  0xe9   :  { %v1676_v52 = vmul.f32 %v1295_v50, %v340_v49 }
  0xeb   :  { %v354_v55 = vpack.c.bf16 %v1676_v52, %v1676_v52 }
  0xed   :  { %363 = vmatmul.bf16.vlgmr.msrb.gmra.mxu2 %v354_v55  ;;  %376 = vmatmul.bf16.vlgmr.msra.gmra.mxu1 %v354_v55 }
  0xee   :  { %402 = vmatmul.bf16.vlgmr.msrb.gmra.mxu3 %v354_v55  ;;  %465 = vmatpush.bf16.msrb.mxu2 %v1519_v10 }
  0xef   :  { %536 = vmatpush.bf16.msra.mxu1 %v1580_v4  ;;  %562 = vmatpush.bf16.msrb.mxu3 %v1528_v21 }
  0xf2   :  { %466 = vmatpush.bf16.msrb.mxu2 %v1522_v13 }
  0xf3   :  { %537 = vmatpush.bf16.msra.mxu1 %v1591_v14  ;;  %563 = vmatpush.bf16.msrb.mxu3 %v1537_v29 }
  0xf6   :  { %467 = vmatpush.bf16.msrb.mxu2 %v1531_v22 }
  0xf7   :  { %538 = vmatpush.bf16.msra.mxu1 %v1600_v24  ;;  %564 = vmatpush.bf16.msrb.mxu3 %v1544_v35 }
  0xfa   :  { %468 = vmatpush.bf16.msrb.mxu2 %v1541_v33 }
  0xfb   :  { %539 = vmatpush.bf16.msra.mxu1 %v1606_v28  ;;  %565 = vmatpush.bf16.msrb.mxu3 %v1554_v45 }
  0xfd   :  { %389 = vmatmul.bf16.vlgmr.msra.gmra.mxu2 %v354_v55 }
  0xfe   :  { %469 = vmatpush.bf16.msrb.mxu2 %v1551_v42 }
  0xff   :  { %540 = vmatpush.bf16.msra.mxu1 %v1612_v32  ;;  %566 = vmatpush.bf16.msrb.mxu3 %v1564_v53 }
 0x102   :  { %470 = vmatpush.bf16.msrb.mxu2 %v1561_v51 }
 0x103   :  { %541 = vmatpush.bf16.msra.mxu1 %v1618_v38  ;;  %567 = vmatpush.bf16.msrb.mxu3 %v1574_v63 }
 0x106   :  { %471 = vmatpush.bf16.msrb.mxu2 %v1571_v62 }
 0x107   :  { %542 = vmatpush.bf16.msra.mxu1 %v1624_v41  ;;  %568 = vmatpush.bf16.msrb.mxu3 %v1587_v12 }
 0x10a   :  { %472 = vmatpush.bf16.msrb.mxu2 %v1583_v11 }
 0x10b   :  { %543 = vmatpush.bf16.msra.mxu1 %v1630_v47  ;;  %569 = vmatpush.bf16.msrb.mxu3 %v1596_v23 }
 0x10e   :  { %549 = vmatpush.bf16.msra.mxu2 %v1519_v10 }
 0x112   :  { %550 = vmatpush.bf16.msra.mxu2 %v1522_v13 }
 0x116   :  { %551 = vmatpush.bf16.msra.mxu2 %v1531_v22 }
 0x11a   :  { %552 = vmatpush.bf16.msra.mxu2 %v1541_v33 }
 0x11e   :  { %553 = vmatpush.bf16.msra.mxu2 %v1551_v42 }
 0x122   :  { %554 = vmatpush.bf16.msra.mxu2 %v1561_v51 }
 0x126   :  { %555 = vmatpush.bf16.msra.mxu2 %v1571_v62 }
 0x12a   :  { %556 = vmatpush.bf16.msra.mxu2 %v1583_v11 }
 0x16a   :  { %v377_v57 = vpop.f32.mrf.mxu1 }
 0x16b   :  { %v408_v61 = vadd.f32 %v377_v57, %v351_v58 }
 0x16d   :  { %v415_v7 = vmul.f32 0.5, %v408_v61 }
 0x16f   :  { %1296 = vtanh.f32 %v415_v7 }
 0x170   :  { %v364_v60 = vpop.f32.mrf.mxu2 }
 0x171   :  { %v403_v1 = vpop.f32.mrf.mxu3  ;;  %v407_v5 = vadd.f32 %v364_v60, %v350_v59 }
 0x172   :  { %v379_v2 = vpop.f32.mrf.mxu1  ;;  %v410_v20 = vadd.f32 %v403_v1, %v353_v18 }
 0x173   :  { %v411_v8 = vmul.f32 0.5, %v407_v5 }
 0x174   :  { %v420_v37 = vmul.f32 0.5, %v410_v20 }
 0x175   :  { %1298 = vtanh.f32 %v411_v8  ;;  %v1297_v26 = vpop.eup %1296 }
 0x176   :  { %v417_v34 = vmul.f32 0.5, %v1297_v26 }
 0x178   :  { %v366_v16 = vpop.f32.mrf.mxu2  ;;  %v418_v40 = vadd.f32 0.5, %v417_v34 }
 0x179   :  { %v405_v17 = vpop.f32.mrf.mxu3 }
 0x17a   :  { %v424_v50 = vmul.f32 %v418_v40, %v1673_v44  ;;  %v432_v44 = vld [vmem:[#allocation5 + $0x20] sm:$0xff]  ;;  %v433_v17 = vld [vmem:[#allocation5 + $0x28] sm:$0xff] }
 0x17b   :  { %v1299_v30 = vpop.eup %1298  ;;  %v434_v2 = vunpack.c.l.bf16 %v432_v44  ;;  %v435_v5 = vunpack.c.h.bf16 %v432_v44  ;;  %v436_v20 = vunpack.c.l.bf16 %v433_v17  ;;  %v437_v26 = vunpack.c.h.bf16 %v433_v17 }
 0x17c   :  { %v413_v39 = vmul.f32 0.5, %v1299_v30 }
 0x17e   :  { %v414_v43 = vadd.f32 0.5, %v413_v39 }
 0x180   :  { %v390_v27 = vpop.f32.mrf.mxu2 }
 0x181   :  { %v409_v31 = vadd.f32 %v390_v27, %v352_v19 }
 0x183   :  { %1300 = vtanh.f32 %v409_v31 }
 0x184   :  { %1302 = vtanh.f32 %v420_v37 }
 0x188   :  { %v392_v48 = vpop.f32.mrf.mxu2 }
 0x189   :  { %v1301_v49 = vpop.eup %1300 }
 0x18a   :  { %v425_v55 = vmul.f32 %v1301_v49, %v414_v43  ;;  %v1303_v56 = vpop.eup %1302 }
 0x18b   :  { %v422_v58 = vmul.f32 0.5, %v1303_v56 }
 0x18c   :  { %v1713_v57 = vadd.f32 %v425_v55, %v424_v50 }
 0x18d   :  { %v423_v59 = vadd.f32 0.5, %v422_v58 }
 0x18e   :  { %1304 = vtanh.f32 %v1713_v57 }
 0x194   :  { %v1305_v60 = vpop.eup %1304 }
 0x195   :  { %v1716_v61 = vmul.f32 %v1305_v60, %v423_v59 }
 0x197   :  { %v438_v1 = vpack.c.bf16 %v1716_v61, %v1716_v61 }
 0x199   :  { %447 = vmatmul.bf16.vlgmr.msra.gmra.mxu0 %v438_v1  ;;  %460 = vmatmul.bf16.vlgmr.msrb.gmra.mxu1 %v438_v1 }
 0x19a   :  { %473 = vmatmul.bf16.vlgmr.msrb.gmra.mxu2 %v438_v1  ;;  %486 = vmatmul.bf16.vlgmr.msra.gmra.mxu3 %v438_v1 }
 0x19b   :  { %607 = vmatpush.bf16.msra.mxu0 %v1513_v3  ;;  %620 = vmatpush.bf16.msrb.mxu1 %v1580_v4 }
 0x19c   :  { %633 = vmatpush.bf16.msrb.mxu2 %v1519_v10  ;;  %646 = vmatpush.bf16.msra.mxu3 %v1528_v21 }
 0x19f   :  { %608 = vmatpush.bf16.msra.mxu0 %v1516_v6  ;;  %621 = vmatpush.bf16.msrb.mxu1 %v1591_v14 }
 0x1a0   :  { %634 = vmatpush.bf16.msrb.mxu2 %v1522_v13  ;;  %647 = vmatpush.bf16.msra.mxu3 %v1537_v29 }
 0x1a3   :  { %609 = vmatpush.bf16.msra.mxu0 %v1525_v15  ;;  %622 = vmatpush.bf16.msrb.mxu1 %v1600_v24 }
 0x1a4   :  { %635 = vmatpush.bf16.msrb.mxu2 %v1531_v22  ;;  %648 = vmatpush.bf16.msra.mxu3 %v1544_v35 }
 0x1a7   :  { %610 = vmatpush.bf16.msra.mxu0 %v1535_v25  ;;  %623 = vmatpush.bf16.msrb.mxu1 %v1606_v28 }
 0x1a8   :  { %636 = vmatpush.bf16.msrb.mxu2 %v1541_v33  ;;  %649 = vmatpush.bf16.msra.mxu3 %v1554_v45 }
 0x1ab   :  { %611 = vmatpush.bf16.msra.mxu0 %v1547_v36  ;;  %624 = vmatpush.bf16.msrb.mxu1 %v1612_v32 }
 0x1ac   :  { %637 = vmatpush.bf16.msrb.mxu2 %v1551_v42  ;;  %650 = vmatpush.bf16.msra.mxu3 %v1564_v53 }
 0x1af   :  { %612 = vmatpush.bf16.msra.mxu0 %v1557_v46  ;;  %625 = vmatpush.bf16.msrb.mxu1 %v1618_v38 }
 0x1b0   :  { %638 = vmatpush.bf16.msrb.mxu2 %v1561_v51  ;;  %651 = vmatpush.bf16.msra.mxu3 %v1574_v63 }
 0x1b3   :  { %613 = vmatpush.bf16.msra.mxu0 %v1567_v54  ;;  %626 = vmatpush.bf16.msrb.mxu1 %v1624_v41 }
 0x1b4   :  { %639 = vmatpush.bf16.msrb.mxu2 %v1571_v62  ;;  %652 = vmatpush.bf16.msra.mxu3 %v1587_v12 }
 0x1b7   :  { %614 = vmatpush.bf16.msra.mxu0 %v1577_v0  ;;  %627 = vmatpush.bf16.msrb.mxu1 %v1630_v47 }
 0x1b8   :  { %640 = vmatpush.bf16.msrb.mxu2 %v1583_v11  ;;  %653 = vmatpush.bf16.msra.mxu3 %v1596_v23 }
 0x216   :  { %v448_v7 = vpop.f32.mrf.mxu0  ;;  %v461_v8 = vpop.f32.mrf.mxu1 }
 0x217   :  { %v491_v9 = vadd.f32 %v448_v7, %v434_v2  ;;  %v492_v16 = vadd.f32 %v461_v8, %v435_v5 }
 0x219   :  { %v495_v18 = vmul.f32 0.5, %v491_v9  ;;  %v499_v19 = vmul.f32 0.5, %v492_v16 }
 0x21b   :  { %1306 = vtanh.f32 %v495_v18 }
 0x21c   :  { %1308 = vtanh.f32 %v499_v19 }
 0x21d   :  { %v474_v27 = vpop.f32.mrf.mxu2  ;;  %v487_v30 = vpop.f32.mrf.mxu3 }
 0x21e   :  { %v493_v31 = vadd.f32 %v474_v27, %v436_v20  ;;  %v494_v34 = vadd.f32 %v487_v30, %v437_v26  ;;  %v450_v37 = vpop.f32.mrf.mxu0  ;;  %v463_v39 = vpop.f32.mrf.mxu1 }
 0x220   :  { %1310 = vtanh.f32 %v493_v31  ;;  %v504_v40 = vmul.f32 0.5, %v494_v34  ;;  %v517_v31 = vld [vmem:[#allocation5 + $0x38] sm:$0xff] }
 0x221   :  { %v1307_v43 = vpop.eup %1306  ;;  %v520_v39 = vunpack.c.l.bf16 %v517_v31 }
 0x222   :  { %v1309_v48 = vpop.eup %1308  ;;  %v497_v49 = vmul.f32 0.5, %v1307_v43  ;;  %1312 = vtanh.f32 %v504_v40  ;;  %v521_v40 = vunpack.c.h.bf16 %v517_v31 }
 0x223   :  { %v501_v50 = vmul.f32 0.5, %v1309_v48 }
 0x224   :  { %v498_v55 = vadd.f32 0.5, %v497_v49 }
 0x225   :  { %v502_v56 = vadd.f32 0.5, %v501_v50  ;;  %v476_v58 = vpop.f32.mrf.mxu2  ;;  %v489_v59 = vpop.f32.mrf.mxu3 }
 0x226   :  { %v1311_v60 = vpop.eup %1310 }
 0x227   :  { %v508_v1 = vmul.f32 %v502_v56, %v1713_v57  ;;  %v509_v44 = vmul.f32 %v1311_v60, %v498_v55  ;;  %v516_v57 = vld [vmem:[#allocation5 + $0x30] sm:$0xff] }
 0x228   :  { %v1313_v2 = vpop.eup %1312  ;;  %v518_v18 = vunpack.c.l.bf16 %v516_v57  ;;  %v519_v19 = vunpack.c.h.bf16 %v516_v57 }
 0x229   :  { %v1753_v5 = vadd.f32 %v509_v44, %v508_v1  ;;  %v506_v7 = vmul.f32 0.5, %v1313_v2 }
 0x22b   :  { %1314 = vtanh.f32 %v1753_v5  ;;  %v507_v8 = vadd.f32 0.5, %v506_v7 }
 0x231   :  { %v1315_v9 = vpop.eup %1314 }
 0x232   :  { %v1756_v16 = vmul.f32 %v1315_v9, %v507_v8 }
 0x234   :  { %v522_v17 = vpack.c.bf16 %v1756_v16, %v1756_v16 }
 0x236   :  { %531 = vmatmul.bf16.vlgmr.msrb.gmra.mxu0 %v522_v17  ;;  %544 = vmatmul.bf16.vlgmr.msra.gmra.mxu1 %v522_v17 }
 0x237   :  { %557 = vmatmul.bf16.vlgmr.msra.gmra.mxu2 %v522_v17  ;;  %570 = vmatmul.bf16.vlgmr.msrb.gmra.mxu3 %v522_v17 }
 0x238   :  { %691 = vmatpush.bf16.msrb.mxu0 %v1513_v3  ;;  %704 = vmatpush.bf16.msra.mxu1 %v1580_v4 }
 0x239   :  { %717 = vmatpush.bf16.msra.mxu2 %v1519_v10  ;;  %730 = vmatpush.bf16.msrb.mxu3 %v1528_v21 }
 0x23c   :  { %692 = vmatpush.bf16.msrb.mxu0 %v1516_v6  ;;  %705 = vmatpush.bf16.msra.mxu1 %v1591_v14 }
 0x23d   :  { %718 = vmatpush.bf16.msra.mxu2 %v1522_v13  ;;  %731 = vmatpush.bf16.msrb.mxu3 %v1537_v29 }
 0x240   :  { %693 = vmatpush.bf16.msrb.mxu0 %v1525_v15  ;;  %706 = vmatpush.bf16.msra.mxu1 %v1600_v24 }
 0x241   :  { %719 = vmatpush.bf16.msra.mxu2 %v1531_v22  ;;  %732 = vmatpush.bf16.msrb.mxu3 %v1544_v35 }
 0x244   :  { %694 = vmatpush.bf16.msrb.mxu0 %v1535_v25  ;;  %707 = vmatpush.bf16.msra.mxu1 %v1606_v28 }
 0x245   :  { %720 = vmatpush.bf16.msra.mxu2 %v1541_v33  ;;  %733 = vmatpush.bf16.msrb.mxu3 %v1554_v45 }
 0x248   :  { %695 = vmatpush.bf16.msrb.mxu0 %v1547_v36  ;;  %708 = vmatpush.bf16.msra.mxu1 %v1612_v32 }
 0x249   :  { %721 = vmatpush.bf16.msra.mxu2 %v1551_v42  ;;  %734 = vmatpush.bf16.msrb.mxu3 %v1564_v53 }
 0x24c   :  { %696 = vmatpush.bf16.msrb.mxu0 %v1557_v46  ;;  %709 = vmatpush.bf16.msra.mxu1 %v1618_v38 }
 0x24d   :  { %722 = vmatpush.bf16.msra.mxu2 %v1561_v51  ;;  %735 = vmatpush.bf16.msrb.mxu3 %v1574_v63 }
 0x250   :  { %697 = vmatpush.bf16.msrb.mxu0 %v1567_v54  ;;  %710 = vmatpush.bf16.msra.mxu1 %v1624_v41 }
 0x251   :  { %723 = vmatpush.bf16.msra.mxu2 %v1571_v62  ;;  %736 = vmatpush.bf16.msrb.mxu3 %v1587_v12 }
 0x254   :  { %698 = vmatpush.bf16.msrb.mxu0 %v1577_v0  ;;  %711 = vmatpush.bf16.msra.mxu1 %v1630_v47 }
 0x255   :  { %724 = vmatpush.bf16.msra.mxu2 %v1583_v11  ;;  %737 = vmatpush.bf16.msrb.mxu3 %v1596_v23 }
 0x2b3   :  { %v532_v20 = vpop.f32.mrf.mxu0  ;;  %v545_v26 = vpop.f32.mrf.mxu1 }
 0x2b4   :  { %v575_v27 = vadd.f32 %v532_v20, %v518_v18  ;;  %v576_v30 = vadd.f32 %v545_v26, %v519_v19 }
 0x2b6   :  { %v579_v34 = vmul.f32 0.5, %v575_v27  ;;  %v583_v37 = vmul.f32 0.5, %v576_v30 }
 0x2b8   :  { %1316 = vtanh.f32 %v579_v34 }
 0x2b9   :  { %1318 = vtanh.f32 %v583_v37 }
 0x2ba   :  { %v558_v43 = vpop.f32.mrf.mxu2  ;;  %v571_v48 = vpop.f32.mrf.mxu3 }
 0x2bb   :  { %v577_v49 = vadd.f32 %v558_v43, %v520_v39  ;;  %v578_v50 = vadd.f32 %v571_v48, %v521_v40  ;;  %v534_v55 = vpop.f32.mrf.mxu0  ;;  %v547_v56 = vpop.f32.mrf.mxu1 }
 0x2bd   :  { %1320 = vtanh.f32 %v577_v49  ;;  %v588_v58 = vmul.f32 0.5, %v578_v50  ;;  %v601_v50 = vld [vmem:[#allocation5 + $0x48] sm:$0xff] }
 0x2be   :  { %v1317_v59 = vpop.eup %1316 }
 0x2bf   :  { %v1319_v60 = vpop.eup %1318  ;;  %v581_v1 = vmul.f32 0.5, %v1317_v59  ;;  %1322 = vtanh.f32 %v588_v58  ;;  %v604_v58 = vunpack.c.l.bf16 %v601_v50  ;;  %v605_v59 = vunpack.c.h.bf16 %v601_v50 }
 0x2c0   :  { %v585_v44 = vmul.f32 0.5, %v1319_v60 }
 0x2c1   :  { %v582_v2 = vadd.f32 0.5, %v581_v1 }
 0x2c2   :  { %v586_v7 = vadd.f32 0.5, %v585_v44  ;;  %v560_v8 = vpop.f32.mrf.mxu2  ;;  %v573_v9 = vpop.f32.mrf.mxu3 }
 0x2c3   :  { %v1321_v17 = vpop.eup %1320 }
 0x2c4   :  { %v592_v57 = vmul.f32 %v586_v7, %v1753_v5  ;;  %v593_v18 = vmul.f32 %v1321_v17, %v582_v2  ;;  %v600_v5 = vld [vmem:[#allocation5 + $0x40] sm:$0xff] }
 0x2c5   :  { %v1323_v19 = vpop.eup %1322  ;;  %v602_v37 = vunpack.c.l.bf16 %v600_v5  ;;  %v603_v39 = vunpack.c.h.bf16 %v600_v5 }
 0x2c6   :  { %v1793_v20 = vadd.f32 %v593_v18, %v592_v57  ;;  %v590_v26 = vmul.f32 0.5, %v1323_v19 }
 0x2c8   :  { %1324 = vtanh.f32 %v1793_v20  ;;  %v591_v27 = vadd.f32 0.5, %v590_v26 }
 0x2ce   :  { %v1325_v30 = vpop.eup %1324 }
 0x2cf   :  { %v1796_v31 = vmul.f32 %v1325_v30, %v591_v27 }
 0x2d1   :  { %v606_v34 = vpack.c.bf16 %v1796_v31, %v1796_v31 }
 0x2d3   :  { %615 = vmatmul.bf16.vlgmr.msra.gmra.mxu0 %v606_v34  ;;  %628 = vmatmul.bf16.vlgmr.msrb.gmra.mxu1 %v606_v34 }
 0x2d4   :  { %641 = vmatmul.bf16.vlgmr.msrb.gmra.mxu2 %v606_v34  ;;  %654 = vmatmul.bf16.vlgmr.msra.gmra.mxu3 %v606_v34 }
 0x2d5   :  { %775 = vmatpush.bf16.msra.mxu0 %v1513_v3  ;;  %788 = vmatpush.bf16.msrb.mxu1 %v1580_v4 }
 0x2d6   :  { %801 = vmatpush.bf16.msrb.mxu2 %v1519_v10  ;;  %814 = vmatpush.bf16.msra.mxu3 %v1528_v21 }
 0x2d9   :  { %776 = vmatpush.bf16.msra.mxu0 %v1516_v6  ;;  %789 = vmatpush.bf16.msrb.mxu1 %v1591_v14 }
 0x2da   :  { %802 = vmatpush.bf16.msrb.mxu2 %v1522_v13  ;;  %815 = vmatpush.bf16.msra.mxu3 %v1537_v29 }
 0x2dd   :  { %777 = vmatpush.bf16.msra.mxu0 %v1525_v15  ;;  %790 = vmatpush.bf16.msrb.mxu1 %v1600_v24 }
 0x2de   :  { %803 = vmatpush.bf16.msrb.mxu2 %v1531_v22  ;;  %816 = vmatpush.bf16.msra.mxu3 %v1544_v35 }
 0x2e1   :  { %778 = vmatpush.bf16.msra.mxu0 %v1535_v25  ;;  %791 = vmatpush.bf16.msrb.mxu1 %v1606_v28 }
 0x2e2   :  { %804 = vmatpush.bf16.msrb.mxu2 %v1541_v33  ;;  %817 = vmatpush.bf16.msra.mxu3 %v1554_v45 }
 0x2e5   :  { %779 = vmatpush.bf16.msra.mxu0 %v1547_v36  ;;  %792 = vmatpush.bf16.msrb.mxu1 %v1612_v32 }
 0x2e6   :  { %805 = vmatpush.bf16.msrb.mxu2 %v1551_v42  ;;  %818 = vmatpush.bf16.msra.mxu3 %v1564_v53 }
 0x2e9   :  { %780 = vmatpush.bf16.msra.mxu0 %v1557_v46  ;;  %793 = vmatpush.bf16.msrb.mxu1 %v1618_v38 }
 0x2ea   :  { %806 = vmatpush.bf16.msrb.mxu2 %v1561_v51  ;;  %819 = vmatpush.bf16.msra.mxu3 %v1574_v63 }
 0x2ed   :  { %781 = vmatpush.bf16.msra.mxu0 %v1567_v54  ;;  %794 = vmatpush.bf16.msrb.mxu1 %v1624_v41 }
 0x2ee   :  { %807 = vmatpush.bf16.msrb.mxu2 %v1571_v62  ;;  %820 = vmatpush.bf16.msra.mxu3 %v1587_v12 }
 0x2f1   :  { %782 = vmatpush.bf16.msra.mxu0 %v1577_v0  ;;  %795 = vmatpush.bf16.msrb.mxu1 %v1630_v47 }
 0x2f2   :  { %808 = vmatpush.bf16.msrb.mxu2 %v1583_v11  ;;  %821 = vmatpush.bf16.msra.mxu3 %v1596_v23 }
 0x350   :  { %v616_v40 = vpop.f32.mrf.mxu0  ;;  %v629_v43 = vpop.f32.mrf.mxu1 }
 0x351   :  { %v659_v48 = vadd.f32 %v616_v40, %v602_v37  ;;  %v660_v49 = vadd.f32 %v629_v43, %v603_v39 }
 0x353   :  { %v663_v55 = vmul.f32 0.5, %v659_v48  ;;  %v667_v56 = vmul.f32 0.5, %v660_v49 }
 0x355   :  { %1326 = vtanh.f32 %v663_v55 }
 0x356   :  { %1328 = vtanh.f32 %v667_v56 }
 0x357   :  { %v642_v60 = vpop.f32.mrf.mxu2  ;;  %v655_v1 = vpop.f32.mrf.mxu3 }
 0x358   :  { %v661_v44 = vadd.f32 %v642_v60, %v604_v58  ;;  %v662_v2 = vadd.f32 %v655_v1, %v605_v59  ;;  %v618_v7 = vpop.f32.mrf.mxu0  ;;  %v631_v8 = vpop.f32.mrf.mxu1 }
 0x359   :  { %v1271_v7 = vld [vmem:[#allocation10 + $0x28] sm:$0xff]  ;;  %v768_v8 = vld [vmem:[#allocation5 + $0x60] sm:$0xff] }
 0x35a   :  { %1330 = vtanh.f32 %v661_v44  ;;  %v672_v9 = vmul.f32 0.5, %v662_v2  ;;  %v1273_v44 = vld [vmem:[#allocation10 + $0x38] sm:$0xff]  ;;  %v1272_v2 = vld [vmem:[#allocation10 + $0x30] sm:$0xff] }
 0x35b   :  { %v1327_v17 = vpop.eup %1326 }
 0x35c   :  { %v1329_v57 = vpop.eup %1328  ;;  %v665_v18 = vmul.f32 0.5, %v1327_v17  ;;  %1332 = vtanh.f32 %v672_v9  ;;  %v1270_v9 = vld [vmem:[#allocation10 + $0x20] sm:$0xff]  ;;  %v770_v17 = vunpack.c.l.bf16 %v768_v8 }
 0x35d   :  { %v669_v19 = vmul.f32 0.5, %v1329_v57  ;;  %v771_v57 = vunpack.c.h.bf16 %v768_v8 }
 0x35e   :  { %v666_v26 = vadd.f32 0.5, %v665_v18 }
 0x35f   :  { %v670_v27 = vadd.f32 0.5, %v669_v19  ;;  %v644_v30 = vpop.f32.mrf.mxu2  ;;  %v657_v34 = vpop.f32.mrf.mxu3 }
 0x360   :  { %v1331_v5 = vpop.eup %1330  ;;  %v769_v34 = vld [vmem:[#allocation5 + $0x68] sm:$0xff] }
 0x361   :  { %v676_v37 = vmul.f32 %v670_v27, %v1793_v20  ;;  %v677_v39 = vmul.f32 %v1331_v5, %v666_v26  ;;  %v1269_v26 = vld [vmem:[#allocation10 + $0x18] sm:$0xff]  ;;  %v1268_v5 = vld [vmem:[#allocation10 + $0x10] sm:$0xff] }
 0x362   :  { %v1333_v40 = vpop.eup %1332 }
 0x363   :  { %v1833_v43 = vadd.f32 %v677_v39, %v676_v37  ;;  %v674_v48 = vmul.f32 0.5, %v1333_v40  ;;  %v772_v40 = vunpack.c.l.bf16 %v769_v34 }
 0x365   :  { %1334 = vtanh.f32 %v1833_v43  ;;  %v675_v49 = vadd.f32 0.5, %v674_v48  ;;  %v1267_v48 = vld [vmem:[#allocation10 + $0x8] sm:$0xff] }
 0x36b   :  { %v1335_v50 = vpop.eup %1334 }
 0x36c   :  { %v1836_v55 = vmul.f32 %v1335_v50, %v675_v49 }
 0x36e   :  { %v690_v56 = vpack.c.bf16 %v1836_v55, %v1836_v55 }
 0x370   :  { %699 = vmatmul.bf16.vlgmr.msrb.gmra.mxu0 %v690_v56  ;;  %712 = vmatmul.bf16.vlgmr.msra.gmra.mxu1 %v690_v56 }
 0x371   :  { %725 = vmatmul.bf16.vlgmr.msra.gmra.mxu2 %v690_v56  ;;  %738 = vmatmul.bf16.vlgmr.msrb.gmra.mxu3 %v690_v56 }
 0x372   :  { %859 = vmatpush.bf16.msrb.mxu0 %v1513_v3  ;;  %872 = vmatpush.bf16.msra.mxu1 %v1580_v4  ;;  %v684_v3 = vld [vmem:[#allocation5 + $0x50] sm:$0xff] }
 0x373   :  { %885 = vmatpush.bf16.msra.mxu2 %v1519_v10  ;;  %898 = vmatpush.bf16.msrb.mxu3 %v1528_v21  ;;  %v687_v10 = vunpack.c.h.bf16 %v684_v3 }
 0x376   :  { %860 = vmatpush.bf16.msrb.mxu0 %v1516_v6  ;;  %873 = vmatpush.bf16.msra.mxu1 %v1591_v14  ;;  %v686_v6 = vunpack.c.l.bf16 %v684_v3 }
 0x377   :  { %886 = vmatpush.bf16.msra.mxu2 %v1522_v13  ;;  %899 = vmatpush.bf16.msrb.mxu3 %v1537_v29 }
 0x37a   :  { %861 = vmatpush.bf16.msrb.mxu0 %v1525_v15  ;;  %874 = vmatpush.bf16.msra.mxu1 %v1600_v24 }
 0x37b   :  { %887 = vmatpush.bf16.msra.mxu2 %v1531_v22  ;;  %900 = vmatpush.bf16.msrb.mxu3 %v1544_v35 }
 0x37e   :  { %862 = vmatpush.bf16.msrb.mxu0 %v1535_v25  ;;  %875 = vmatpush.bf16.msra.mxu1 %v1606_v28  ;;  %v685_v25 = vld [vmem:[#allocation5 + $0x58] sm:$0xff] }
 0x37f   :  { %888 = vmatpush.bf16.msra.mxu2 %v1541_v33  ;;  %901 = vmatpush.bf16.msrb.mxu3 %v1554_v45  ;;  %v688_v35 = vunpack.c.l.bf16 %v685_v25 }
 0x382   :  { %863 = vmatpush.bf16.msrb.mxu0 %v1547_v36  ;;  %876 = vmatpush.bf16.msra.mxu1 %v1612_v32  ;;  %v689_v36 = vunpack.c.h.bf16 %v685_v25 }
 0x383   :  { %889 = vmatpush.bf16.msra.mxu2 %v1551_v42  ;;  %902 = vmatpush.bf16.msrb.mxu3 %v1564_v53 }
 0x386   :  { %864 = vmatpush.bf16.msrb.mxu0 %v1557_v46  ;;  %877 = vmatpush.bf16.msra.mxu1 %v1618_v38 }
 0x387   :  { %890 = vmatpush.bf16.msra.mxu2 %v1561_v51  ;;  %903 = vmatpush.bf16.msrb.mxu3 %v1574_v63 }
 0x38a   :  { %865 = vmatpush.bf16.msrb.mxu0 %v1567_v54  ;;  %878 = vmatpush.bf16.msra.mxu1 %v1624_v41 }
 0x38b   :  { %891 = vmatpush.bf16.msra.mxu2 %v1571_v62  ;;  %904 = vmatpush.bf16.msrb.mxu3 %v1587_v12 }
 0x38e   :  { %866 = vmatpush.bf16.msrb.mxu0 %v1577_v0  ;;  %879 = vmatpush.bf16.msra.mxu1 %v1630_v47 }
 0x38f   :  { %892 = vmatpush.bf16.msra.mxu2 %v1583_v11  ;;  %905 = vmatpush.bf16.msrb.mxu3 %v1596_v23 }
 0x3ed   :  { %v700_v13 = vpop.f32.mrf.mxu0  ;;  %v713_v15 = vpop.f32.mrf.mxu1 }
 0x3ee   :  { %v743_v21 = vadd.f32 %v700_v13, %v686_v6  ;;  %v744_v22 = vadd.f32 %v713_v15, %v687_v10  ;;  %v1266_v15 = vld [vmem:[#allocation10] sm:$0xff] }
 0x3f0   :  { %v747_v29 = vmul.f32 0.5, %v743_v21  ;;  %v751_v33 = vmul.f32 0.5, %v744_v22 }
 0x3f2   :  { %1336 = vtanh.f32 %v747_v29 }
 0x3f3   :  { %1338 = vtanh.f32 %v751_v33 }
 0x3f4   :  { %v726_v42 = vpop.f32.mrf.mxu2  ;;  %v739_v45 = vpop.f32.mrf.mxu3 }
 0x3f5   :  { %v745_v46 = vadd.f32 %v726_v42, %v688_v35  ;;  %v746_v51 = vadd.f32 %v739_v45, %v689_v36  ;;  %v702_v53 = vpop.f32.mrf.mxu0  ;;  %v715_v54 = vpop.f32.mrf.mxu1 }
 0x3f7   :  { %1340 = vtanh.f32 %v745_v46  ;;  %v756_v62 = vmul.f32 0.5, %v746_v51 }
 0x3f8   :  { %v1337_v63 = vpop.eup %1336 }
 0x3f9   :  { %v1339_v0 = vpop.eup %1338  ;;  %v749_v4 = vmul.f32 0.5, %v1337_v63  ;;  %1342 = vtanh.f32 %v756_v62 }
 0x3fa   :  { %v753_v11 = vmul.f32 0.5, %v1339_v0 }
 0x3fb   :  { %v750_v12 = vadd.f32 0.5, %v749_v4 }
 0x3fc   :  { %v754_v14 = vadd.f32 0.5, %v753_v11  ;;  %v728_v23 = vpop.f32.mrf.mxu2  ;;  %v741_v24 = vpop.f32.mrf.mxu3 }
 0x3fd   :  { %v1341_v28 = vpop.eup %1340  ;;  %v852_v24 = vld [vmem:[#allocation5 + $0x70] sm:$0xff] }
 0x3fe   :  { %v760_v32 = vmul.f32 %v754_v14, %v1833_v43  ;;  %v761_v38 = vmul.f32 %v1341_v28, %v750_v12  ;;  %v773_v43 = vunpack.c.h.bf16 %v769_v34  ;;  %v945_v12 = vpack.c.bf16 %v1716_v61, %v1676_v52 }
 0x3ff   :  { %v1343_v41 = vpop.eup %1342  ;;  %v946_v14 = vpack.c.bf16 %v1796_v31, %v1756_v16  ;;  %v854_v28 = vunpack.c.l.bf16 %v852_v24 }
 0x400   :  { %v762_v47 = vadd.f32 %v761_v38, %v760_v32  ;;  %v758_v20 = vmul.f32 0.5, %v1343_v41  ;;  %v855_v32 = vunpack.c.h.bf16 %v852_v24 }
 0x402   :  { %1344 = vtanh.f32 %v762_v47  ;;  %v759_v58 = vadd.f32 0.5, %v758_v20 }
 0x408   :  { %v1345_v59 = vpop.eup %1344 }
 0x409   :  { %v1873_v60 = vmul.f32 %v1345_v59, %v759_v58  ;;  %v853_v58 = vld [vmem:[#allocation5 + $0x78] sm:$0xff] }
 0x40a   :  { %v856_v52 = vunpack.c.l.bf16 %v853_v58  ;;  %v857_v61 = vunpack.c.h.bf16 %v853_v58 }
 0x40b   :  { %v774_v1 = vpack.c.bf16 %v1873_v60, %v1873_v60  ;;  %v947_v23 = vpack.c.bf16 %v1873_v60, %v1836_v55 }
 0x40d   :  { %783 = vmatmul.bf16.vlgmr.msra.gmra.mxu0 %v774_v1  ;;  %796 = vmatmul.bf16.vlgmr.msrb.gmra.mxu1 %v774_v1 }
 0x40e   :  { %809 = vmatmul.bf16.vlgmr.msrb.gmra.mxu2 %v774_v1  ;;  %822 = vmatmul.bf16.vlgmr.msra.gmra.mxu3 %v774_v1 }
 0x40f   :  { %1017 = vmatpush.bf16.msra.mxu0 %v1273_v44 }
 0x413   :  { %1018 = vmatpush.bf16.msra.mxu0 %v1272_v2 }
 0x417   :  { %1019 = vmatpush.bf16.msra.mxu0 %v1271_v7 }
 0x41b   :  { %1020 = vmatpush.bf16.msra.mxu0 %v1270_v9 }
 0x41f   :  { %1021 = vmatpush.bf16.msra.mxu0 %v1269_v26 }
 0x423   :  { %1022 = vmatpush.bf16.msra.mxu0 %v1268_v5 }
 0x427   :  { %1023 = vmatpush.bf16.msra.mxu0 %v1267_v48 }
 0x42b   :  { %1024 = vmatpush.bf16.msra.mxu0 %v1266_v15 }
 0x48a   :  { %v784_v18 = vpop.f32.mrf.mxu0  ;;  %v797_v19 = vpop.f32.mrf.mxu1 }
 0x48b   :  { %v827_v27 = vadd.f32 %v784_v18, %v770_v17  ;;  %v828_v30 = vadd.f32 %v797_v19, %v771_v57  ;;  %v1285_v18 = vld [vmem:[%s1892_s3] ss:$0 sm:$0xff]  ;;  %s1476_s3 = smov [#allocation11]  }
 0x48c   :  { %s1058_s7 = sshll.u32 %s1476_s3, 4  ;;  %s1059_s7 = int_to_ptr.vmem [resolvable:$true] %s1058_s7 }
 0x48d   :  { %v831_v37 = vmul.f32 0.5, %v827_v27  ;;  %v835_v39 = vmul.f32 0.5, %v828_v30 }
 0x48f   :  { %1346 = vtanh.f32 %v831_v37 }
 0x490   :  { %1348 = vtanh.f32 %v835_v39 }
 0x491   :  { %v810_v49 = vpop.f32.mrf.mxu2  ;;  %v823_v50 = vpop.f32.mrf.mxu3 }
 0x492   :  { %v829_v56 = vadd.f32 %v810_v49, %v772_v40  ;;  %v830_v3 = vadd.f32 %v823_v50, %v773_v43  ;;  %v786_v6 = vpop.f32.mrf.mxu0  ;;  %v799_v10 = vpop.f32.mrf.mxu1 }
 0x494   :  { %1350 = vtanh.f32 %v829_v56  ;;  %v840_v13 = vmul.f32 0.5, %v830_v3 }
 0x495   :  { %v1347_v21 = vpop.eup %1346 }
 0x496   :  { %v1349_v22 = vpop.eup %1348  ;;  %v833_v25 = vmul.f32 0.5, %v1347_v21  ;;  %1352 = vtanh.f32 %v840_v13 }
 0x497   :  { %v837_v29 = vmul.f32 0.5, %v1349_v22 }
 0x498   :  { %v834_v33 = vadd.f32 0.5, %v833_v25 }
 0x499   :  { %v838_v35 = vadd.f32 0.5, %v837_v29  ;;  %v812_v36 = vpop.f32.mrf.mxu2  ;;  %v825_v42 = vpop.f32.mrf.mxu3 }
 0x49a   :  { %v1351_v45 = vpop.eup %1350 }
 0x49b   :  { %v844_v46 = vmul.f32 %v838_v35, %v762_v47  ;;  %v845_v51 = vmul.f32 %v1351_v45, %v834_v33 }
 0x49c   :  { %v1353_v53 = vpop.eup %1352 }
 0x49d   :  { %v846_v54 = vadd.f32 %v845_v51, %v844_v46  ;;  %v842_v62 = vmul.f32 0.5, %v1353_v53 }
 0x49f   :  { %1354 = vtanh.f32 %v846_v54  ;;  %v843_v63 = vadd.f32 0.5, %v842_v62 }
 0x4a5   :  { %v1355_v0 = vpop.eup %1354 }
 0x4a6   :  { %v848_v4 = vmul.f32 %v1355_v0, %v843_v63 }
 0x4a8   :  { %v858_v11 = vpack.c.bf16 %v848_v4, %v848_v4 }
 0x4aa   :  { %867 = vmatmul.bf16.vlgmr.msrb.gmra.mxu0 %v858_v11  ;;  %880 = vmatmul.bf16.vlgmr.msra.gmra.mxu1 %v858_v11 }
 0x4ab   :  { %893 = vmatmul.bf16.vlgmr.msra.gmra.mxu2 %v858_v11  ;;  %906 = vmatmul.bf16.vlgmr.msrb.gmra.mxu3 %v858_v11 }
 0x4ba   :  { %1025 = vmatmul.bf16.vlgmr.msra.gmra.mxu0 %v945_v12 }
 0x4ca   :  { %1030 = vmatmul.bf16.gmra.mxu0 %v946_v14 }
 0x4da   :  { %1035 = vmatmul.bf16.gmra.mxu0 %v947_v23 }
 0x527   :  { %v868_v38 = vpop.f32.mrf.mxu0  ;;  %v881_v41 = vpop.f32.mrf.mxu1 }
 0x528   :  { %v911_v47 = vadd.f32 %v868_v38, %v854_v28  ;;  %v912_v20 = vadd.f32 %v881_v41, %v855_v32 }
 0x52a   :  { %v915_v59 = vmul.f32 0.5, %v911_v47  ;;  %v919_v1 = vmul.f32 0.5, %v912_v20 }
 0x52c   :  { %1356 = vtanh.f32 %v915_v59 }
 0x52d   :  { %1358 = vtanh.f32 %v919_v1 }
 0x52e   :  { %v894_v16 = vpop.f32.mrf.mxu2  ;;  %v907_v31 = vpop.f32.mrf.mxu3 }
 0x52f   :  { %v913_v44 = vadd.f32 %v894_v16, %v856_v52  ;;  %v914_v2 = vadd.f32 %v907_v31, %v857_v61  ;;  %v870_v55 = vpop.f32.mrf.mxu0  ;;  %v883_v60 = vpop.f32.mrf.mxu1 }
 0x531   :  { %1360 = vtanh.f32 %v913_v44  ;;  %v924_v7 = vmul.f32 0.5, %v914_v2 }
 0x532   :  { %v1357_v8 = vpop.eup %1356 }
 0x533   :  { %v1359_v9 = vpop.eup %1358  ;;  %v917_v17 = vmul.f32 0.5, %v1357_v8  ;;  %1362 = vtanh.f32 %v924_v7 }
 0x534   :  { %v921_v57 = vmul.f32 0.5, %v1359_v9 }
 0x535   :  { %v918_v19 = vadd.f32 0.5, %v917_v17 }
 0x536   :  { %v922_v26 = vadd.f32 0.5, %v921_v57  ;;  %v896_v27 = vpop.f32.mrf.mxu2  ;;  %v909_v30 = vpop.f32.mrf.mxu3 }
 0x537   :  { %v1361_v34 = vpop.eup %1360  ;;  %v1026_v5 = vpop.f32.mrf.mxu0 }
 0x538   :  { %v928_v37 = vmul.f32 %v922_v26, %v846_v54  ;;  %v929_v39 = vmul.f32 %v1361_v34, %v918_v19  ;;  %v1027_v40 = vadd.f32 %v1285_v18, %v1026_v5 }
 0x539   :  { %v1363_v43 = vpop.eup %1362 }
 0x53a   :  { %v930_v48 = vadd.f32 %v929_v39, %v928_v37  ;;  %1046 = vst [vmem:[#allocation11] sm:$0xff] %v1027_v40  ;;  %v926_v49 = vmul.f32 0.5, %v1363_v43 }
 0x53c   :  { %1364 = vtanh.f32 %v930_v48  ;;  %v927_v3 = vadd.f32 0.5, %v926_v49 }
 0x53f   :  { %v1028_v50 = vpop.f32.mrf.mxu0 }
 0x540   :  { %v1029_v56 = vadd.f32 %v1285_v18, %v1028_v50 }
 0x542   :  { %v1365_v6 = vpop.eup %1364  ;;  %1047 = vst [vmem:[#allocation11 + $0x8] sm:$0xff] %v1029_v56 }
 0x543   :  { %v932_v10 = vmul.f32 %v1365_v6, %v927_v3 }
 0x545   :  { %v948_v13 = vpack.c.bf16 %v932_v10, %v848_v4 }
 0x547   :  { %1040 = vmatmul.bf16.gmra.mxu0 %v948_v13  ;;  %v1031_v15 = vpop.f32.mrf.mxu0 }
 0x548   :  { %v1032_v21 = vadd.f32 %v1285_v18, %v1031_v15 }
 0x54a   :  { %1048 = vst [vmem:[#allocation11 + $0x10] sm:$0xff] %v1032_v21 }
 0x54f   :  { %v1033_v22 = vpop.f32.mrf.mxu0 }
 0x550   :  { %v1034_v25 = vadd.f32 %v1285_v18, %v1033_v22 }
 0x552   :  { %1049 = vst [vmem:[#allocation11 + $0x18] sm:$0xff] %v1034_v25 }
 0x557   :  { %v1036_v29 = vpop.f32.mrf.mxu0 }
 0x558   :  { %v1037_v33 = vadd.f32 %v1285_v18, %v1036_v29 }
 0x55a   :  { %1050 = vst [vmem:[#allocation11 + $0x20] sm:$0xff] %v1037_v33 }
 0x55f   :  { %v1038_v35 = vpop.f32.mrf.mxu0 }
 0x560   :  { %v1039_v36 = vadd.f32 %v1285_v18, %v1038_v35 }
 0x562   :  { %1051 = vst [vmem:[#allocation11 + $0x28] sm:$0xff] %v1039_v36 }
 0x5c4   :  { %v1041_v42 = vpop.f32.mrf.mxu0 }
 0x5c5   :  { %v1042_v45 = vadd.f32 %v1285_v18, %v1041_v42 }
 0x5c7   :  { %1052 = vst [vmem:[#allocation11 + $0x30] sm:$0xff] %v1042_v45 }
 0x5cc   :  { %v1043_v46 = vpop.f32.mrf.mxu0 }
 0x5cd   :  { %v1044_v51 = vadd.f32 %v1285_v18, %v1043_v46 }
 0x5cf   :  { %1053 = vst [vmem:[#allocation11 + $0x38] sm:$0xff] %v1044_v51 }
 0x5d0   :  { %1066 = dma.vmem_to_hbm [thread:$0]  %s1059_s7, 1024, %s1061_s10, [#allocation7], %s1477_s11, %s1477_s11, %s1478_s12  }
 0x5d1   :  { %1466 = dma.done.wait [#allocation7], 1024  }
 0x5d2   :  { %1467 = vsyncadd [#allocation7], 4294966272 }
 0x5d3   :  { %1071 = vsyncpa [#allocation6], 1 }
 0x5d4   :  { %1072 = vsyncpa [#allocation9], 1 }
 0x5d5   :  { %1073 = vsyncpa [#allocation7], 1 }

</bundles_post_ra>
